<compile_context>
chip_gen: v6e
topology: v6e:2x2x1
jax: 0.10.0
libtpu: 0.0.40
codegen_flags: <defaults>
</compile_context>

<pallas_src>
import functools

import jax
import jax.numpy as jnp
from jax.experimental import pallas as pl
from jax.experimental.pallas import tpu as pltpu


def _mlp_kernel(x_ref, w1_ref, b1_ref, w2_ref, b2_ref, w3_ref, b3_ref,
                w4_ref, b4_ref, o_ref):
    """One column-tile (tm rows on the lane axis) of the fused 4-layer MLP.

    Everything is computed transposed: activations have shape (features, tm),
    so every input / intermediate / output block is lane-dense.  All four
    layers are bf16 MXU matmuls with f32 accumulation; bias-add + ReLU
    epilogues are bf16 on the VPU; the final bias-add/store stays f32.
    """
    x = x_ref[...].astype(jnp.bfloat16)                                # (4, tm)

    h = jnp.dot(w1_ref[...], x, preferred_element_type=jnp.float32)    # (H, tm)
    h = jnp.maximum(h.astype(jnp.bfloat16) + b1_ref[...], 0)

    h = jnp.dot(w2_ref[...], h, preferred_element_type=jnp.float32)    # (H, tm)
    h = jnp.maximum(h.astype(jnp.bfloat16) + b2_ref[...], 0)

    h = jnp.dot(w3_ref[...], h, preferred_element_type=jnp.float32)    # (H, tm)
    h = jnp.maximum(h.astype(jnp.bfloat16) + b3_ref[...], 0)

    y = jnp.dot(w4_ref[...], h, preferred_element_type=jnp.float32)    # (3, tm)
    y = y + b4_ref[...]
    o_ref[...] = y.astype(o_ref.dtype)


def _round_up(x, m):
    return ((x + m - 1) // m) * m


def _choose_tiling(n_rows, tile_m):
    """Pick (tm, n_steps): tm is a multiple of 128 (lane quantum) and the step
    count is even and >= 4 when the row count allows it (v7x megacore balance)."""
    lane = 128
    tile_m = max(lane, _round_up(tile_m, lane))
    n_lanes = _round_up(n_rows, lane)
    if n_lanes <= tile_m:
        if n_lanes >= 4 * lane:
            steps = 4
        elif n_lanes >= 2 * lane:
            steps = 2
        else:
            steps = 1
    else:
        steps = -(-n_lanes // tile_m)          # cdiv
        steps = max(steps, 4)
        if steps % 2:
            steps += 1
    tm = _round_up(-(-n_rows // steps), lane)
    return tm, steps


@functools.partial(jax.jit, static_argnames=("tile_m",))
def mlp_forward(x_t, t, params, tile_m=2048):
    """x_t: (B, L, 3), t: (B, 1)  ->  score: (B, L, 3)."""
    B, L, _ = x_t.shape
    N = B * L
    H = params["w1"].shape[0]          # weights stored PyTorch-style (out, in)
    dout = params["w4"].shape[0]

    tm, n_steps = _choose_tiling(N, tile_m)
    N_pad = tm * n_steps

    # Build the concatenated input once in the wrapper and hand it to the kernel
    # as a single lane-dense (4, N_pad) stream (rows on the 128-lane axis).
    x_flat = x_t.reshape(N, 3).astype(jnp.float32)
    t_rows = jnp.broadcast_to(t.astype(jnp.float32)[:, :, None],
                              (B, L, 1)).reshape(N, 1)
    xin = jnp.concatenate([x_flat, t_rows], axis=-1)        # (N, 4)
    if N_pad != N:
        xin = jnp.pad(xin, ((0, N_pad - N), (0, 0)))
    xin_t = xin.T                                           # (4, N_pad) lane-dense

    x_spec = pl.BlockSpec((4, tm), lambda i: (0, i))
    out_spec = pl.BlockSpec((dout, tm), lambda i: (0, i))
    full = lambda shape: pl.BlockSpec(shape, lambda i: (0, 0))

    flops = 2 * N_pad * H * (4 + H + H + dout)
    bytes_accessed = (
        N_pad * 4 * 4                         # input (4, N_pad) f32
        + N_pad * dout * 4                    # output (dout, N_pad) f32
        + (H * 4 + 2 * H * H + dout * H) * 2  # bf16 weights
        + 3 * H * 2 + dout * 4)               # biases

    out_t = pl.pallas_call(
        _mlp_kernel,
        out_shape=jax.ShapeDtypeStruct((dout, N_pad), x_t.dtype),
        grid_spec=pltpu.PrefetchScalarGridSpec(
            num_scalar_prefetch=0,
            grid=(n_steps,),
            in_specs=[
                x_spec,
                full((H, 4)), full((H, 1)),       # layer 1
                full((H, H)), full((H, 1)),       # layer 2
                full((H, H)), full((H, 1)),       # layer 3
                full((dout, H)), full((dout, 1)),  # layer 4
            ],
            out_specs=out_spec,
        ),
        compiler_params=pltpu.CompilerParams(
            dimension_semantics=("parallel",)),
        cost_estimate=pl.CostEstimate(
            flops=flops, transcendentals=0, bytes_accessed=bytes_accessed),
    )(xin_t,
      params["w1"], params["b1"],
      params["w2"], params["b2"],
      params["w3"], params["b3"],
      params["w4"], params["b4"])

    # (dout, N_pad) -> (B, L, dout); padded columns are sliced off.
    return out_t[:, :N].T.reshape(B, L, dout)


def init_params(key, hidden_dim=256):
    """PyTorch nn.Linear-style init (U(-1/sqrt(fan_in), +1/sqrt(fan_in))).

    Weights stored (out, in) -- matching nn.Linear and the transposed kernel.
    Weights and hidden-layer biases are bf16 (MXU / bf16 epilogues); the final
    bias stays f32 (added to the f32 accumulator before the store).
    """
    dims = [(hidden_dim, 4), (hidden_dim, hidden_dim),
            (hidden_dim, hidden_dim), (3, hidden_dim)]
    params = {}
    keys = jax.random.split(key, 2 * len(dims))
    for idx, (dout, din) in enumerate(dims):
        bound = 1.0 / float(jnp.sqrt(jnp.float32(din)))
        w = jax.random.uniform(keys[2 * idx], (dout, din), jnp.float32,
                               minval=-bound, maxval=bound)
        b = jax.random.uniform(keys[2 * idx + 1], (dout, 1), jnp.float32,
                               minval=-bound, maxval=bound)
        params[f"w{idx + 1}"] = w.astype(jnp.bfloat16)
        params[f"b{idx + 1}"] = b if idx == 3 else b.astype(jnp.bfloat16)
    return params


def _reference(x_t, t, params):
    """f32 reference using the same (bf16-stored) weights."""
    B, L, _ = x_t.shape
    t_exp = jnp.broadcast_to(t[:, :, None], (B, L, 1)).astype(jnp.float32)
    h = jnp.concatenate([x_t.astype(jnp.float32), t_exp], axis=-1)
    for i in range(1, 5):
        w = params[f"w{i}"].astype(jnp.float32)          # (out, in)
        b = params[f"b{i}"].astype(jnp.float32).reshape(-1)
        h = h @ w.T + b
        if i < 4:
            h = jnp.maximum(h, 0.0)
    return h


if __name__ == "__main__":
    key = jax.random.PRNGKey(0)
    k_params, k_x, k_t, k_x2, k_t2 = jax.random.split(key, 5)

    # Small shapes consistent with the module.
    B, L, hidden_dim = 2, 8, 256
    params = init_params(k_params, hidden_dim=hidden_dim)

    x_t = jax.random.normal(k_x, (B, L, 3), jnp.float32)
    t = jax.random.uniform(k_t, (B, 1), jnp.float32)

    score = jax.block_until_ready(mlp_forward(x_t, t, params))
    ref = _reference(x_t, t, params)
    assert score.shape == (B, L, 3), score.shape
    # bf16 matmul operands + bf16 epilogues (f32 accumulation) -> loose tolerance.
    assert jnp.allclose(score, ref, atol=5e-2, rtol=5e-2), "mismatch vs reference"

    # Second check: exercises the multi-step (padded, even >=4 grid) path.
    B2, L2 = 4, 300
    x_t2 = jax.random.normal(k_x2, (B2, L2, 3), jnp.float32)
    t2 = jax.random.uniform(k_t2, (B2, 1), jnp.float32)
    score2 = jax.block_until_ready(mlp_forward(x_t2, t2, params))
    ref2 = _reference(x_t2, t2, params)
    assert score2.shape == (B2, L2, 3), score2.shape
    assert jnp.allclose(score2, ref2, atol=5e-2, rtol=5e-2), "mismatch (large)"

    print("KERNEL_OK")
</pallas_src>

<mosaic_0001>
module attributes {stable_mosaic.version = 11 : i64} {
  func.func @_mlp_kernel(%arg0: i32, %arg1: memref<4x128xf32, #tpu.memory_space<vmem>>, %arg2: memref<256x4xbf16, #tpu.memory_space<vmem>>, %arg3: memref<256x1xbf16, #tpu.memory_space<vmem>>, %arg4: memref<256x256xbf16, #tpu.memory_space<vmem>>, %arg5: memref<256x1xbf16, #tpu.memory_space<vmem>>, %arg6: memref<256x256xbf16, #tpu.memory_space<vmem>>, %arg7: memref<256x1xbf16, #tpu.memory_space<vmem>>, %arg8: memref<3x256xbf16, #tpu.memory_space<vmem>>, %arg9: memref<3x1xf32, #tpu.memory_space<vmem>>, %arg10: memref<3x128xf32, #tpu.memory_space<vmem>>) attributes {dimension_semantics = [#tpu.dimension_semantics<parallel>], iteration_bounds = array<i64: 1>, scalar_prefetch = 0 : i64, scratch_operands = 0 : i64, tpu.core_type = #tpu.core_type<tc>, window_params = [{transform_indices = @transform_0, window_bounds = array<i64: 4, 128>}, {pipeline_mode = #tpu.pipeline_mode<synchronous>, transform_indices = @transform_1, window_bounds = array<i64: 256, 4>}, {pipeline_mode = #tpu.pipeline_mode<synchronous>, transform_indices = @transform_2, window_bounds = array<i64: 256, 1>}, {pipeline_mode = #tpu.pipeline_mode<synchronous>, transform_indices = @transform_3, window_bounds = array<i64: 256, 256>}, {pipeline_mode = #tpu.pipeline_mode<synchronous>, transform_indices = @transform_4, window_bounds = array<i64: 256, 1>}, {pipeline_mode = #tpu.pipeline_mode<synchronous>, transform_indices = @transform_5, window_bounds = array<i64: 256, 256>}, {pipeline_mode = #tpu.pipeline_mode<synchronous>, transform_indices = @transform_6, window_bounds = array<i64: 256, 1>}, {pipeline_mode = #tpu.pipeline_mode<synchronous>, transform_indices = @transform_7, window_bounds = array<i64: 3, 256>}, {pipeline_mode = #tpu.pipeline_mode<synchronous>, transform_indices = @transform_8, window_bounds = array<i64: 3, 1>}, {transform_indices = @transform_9, window_bounds = array<i64: 3, 128>}]} {
    %c0 = arith.constant 0 : index
    %c0_0 = arith.constant 0 : index
    %0 = vector.load %arg1[%c0, %c0_0] : memref<4x128xf32, #tpu.memory_space<vmem>>, vector<4x128xf32>
    %1 = arith.truncf %0 : vector<4x128xf32> to vector<4x128xbf16>
    %c0_1 = arith.constant 0 : index
    %c0_2 = arith.constant 0 : index
    %2 = vector.load %arg2[%c0_1, %c0_2] : memref<256x4xbf16, #tpu.memory_space<vmem>>, vector<256x4xbf16>
    %cst = arith.constant dense<0.000000e+00> : vector<256x128xf32>
    %3 = tpu.matmul %2, %1, %cst {dimension_numbers = #tpu.dot_dimension_numbers<[1], [0], [0], [1], [0, 0, 1, 1], [], []>} : vector<256x4xbf16>, vector<4x128xbf16>, vector<256x128xf32> -> vector<256x128xf32>
    %4 = arith.truncf %3 : vector<256x128xf32> to vector<256x128xbf16>
    %c0_3 = arith.constant 0 : index
    %c0_4 = arith.constant 0 : index
    %5 = vector.load %arg3[%c0_3, %c0_4] : memref<256x1xbf16, #tpu.memory_space<vmem>>, vector<256x1xbf16>
    %6 = vector.broadcast %5 : vector<256x1xbf16> to vector<256x128xbf16>
    %7 = arith.addf %4, %6 : vector<256x128xbf16>
    %cst_5 = arith.constant 0.000000e+00 : bf16
    %8 = vector.broadcast %cst_5 : bf16 to vector<256x128xbf16>
    %9 = arith.maximumf %7, %8 : vector<256x128xbf16>
    %c0_6 = arith.constant 0 : index
    %c0_7 = arith.constant 0 : index
    %10 = vector.load %arg4[%c0_6, %c0_7] : memref<256x256xbf16, #tpu.memory_space<vmem>>, vector<256x256xbf16>
    %cst_8 = arith.constant dense<0.000000e+00> : vector<256x128xf32>
    %11 = tpu.matmul %10, %9, %cst_8 {dimension_numbers = #tpu.dot_dimension_numbers<[1], [0], [0], [1], [0, 0, 1, 1], [], []>} : vector<256x256xbf16>, vector<256x128xbf16>, vector<256x128xf32> -> vector<256x128xf32>
    %12 = arith.truncf %11 : vector<256x128xf32> to vector<256x128xbf16>
    %c0_9 = arith.constant 0 : index
    %c0_10 = arith.constant 0 : index
    %13 = vector.load %arg5[%c0_9, %c0_10] : memref<256x1xbf16, #tpu.memory_space<vmem>>, vector<256x1xbf16>
    %14 = vector.broadcast %13 : vector<256x1xbf16> to vector<256x128xbf16>
    %15 = arith.addf %12, %14 : vector<256x128xbf16>
    %cst_11 = arith.constant 0.000000e+00 : bf16
    %16 = vector.broadcast %cst_11 : bf16 to vector<256x128xbf16>
    %17 = arith.maximumf %15, %16 : vector<256x128xbf16>
    %c0_12 = arith.constant 0 : index
    %c0_13 = arith.constant 0 : index
    %18 = vector.load %arg6[%c0_12, %c0_13] : memref<256x256xbf16, #tpu.memory_space<vmem>>, vector<256x256xbf16>
    %cst_14 = arith.constant dense<0.000000e+00> : vector<256x128xf32>
    %19 = tpu.matmul %18, %17, %cst_14 {dimension_numbers = #tpu.dot_dimension_numbers<[1], [0], [0], [1], [0, 0, 1, 1], [], []>} : vector<256x256xbf16>, vector<256x128xbf16>, vector<256x128xf32> -> vector<256x128xf32>
    %20 = arith.truncf %19 : vector<256x128xf32> to vector<256x128xbf16>
    %c0_15 = arith.constant 0 : index
    %c0_16 = arith.constant 0 : index
    %21 = vector.load %arg7[%c0_15, %c0_16] : memref<256x1xbf16, #tpu.memory_space<vmem>>, vector<256x1xbf16>
    %22 = vector.broadcast %21 : vector<256x1xbf16> to vector<256x128xbf16>
    %23 = arith.addf %20, %22 : vector<256x128xbf16>
    %cst_17 = arith.constant 0.000000e+00 : bf16
    %24 = vector.broadcast %cst_17 : bf16 to vector<256x128xbf16>
    %25 = arith.maximumf %23, %24 : vector<256x128xbf16>
    %c0_18 = arith.constant 0 : index
    %c0_19 = arith.constant 0 : index
    %26 = vector.load %arg8[%c0_18, %c0_19] : memref<3x256xbf16, #tpu.memory_space<vmem>>, vector<3x256xbf16>
    %cst_20 = arith.constant dense<0.000000e+00> : vector<3x128xf32>
    %27 = tpu.matmul %26, %25, %cst_20 {dimension_numbers = #tpu.dot_dimension_numbers<[1], [0], [0], [1], [0, 0, 1, 1], [], []>} : vector<3x256xbf16>, vector<256x128xbf16>, vector<3x128xf32> -> vector<3x128xf32>
    %c0_21 = arith.constant 0 : index
    %c0_22 = arith.constant 0 : index
    %28 = vector.load %arg9[%c0_21, %c0_22] : memref<3x1xf32, #tpu.memory_space<vmem>>, vector<3x1xf32>
    %29 = vector.broadcast %28 : vector<3x1xf32> to vector<3x128xf32>
    %30 = arith.addf %27, %29 : vector<3x128xf32>
    %c0_23 = arith.constant 0 : index
    %c0_24 = arith.constant 0 : index
    %31 = vector.load %arg10[%c0_23, %c0_24] : memref<3x128xf32, #tpu.memory_space<vmem>>, vector<3x128xf32>
    tpu.vector_store %arg10[%c0_23, %c0_24], %30 {strides = array<i32>} : memref<3x128xf32, #tpu.memory_space<vmem>>, vector<3x128xf32>,
    return
  }
  func.func @transform_0(%arg0: i32) -> (i32, i32) {
    %c0_i32 = arith.constant 0 : i32
    %c0_i32_0 = arith.constant 0 : i32
    return %c0_i32, %arg0 : i32, i32
  }
  func.func @transform_1(%arg0: i32) -> (i32, i32) {
    %c0_i32 = arith.constant 0 : i32
    %c0_i32_0 = arith.constant 0 : i32
    %c0_i32_1 = arith.constant 0 : i32
    return %c0_i32, %c0_i32_0 : i32, i32
  }
  func.func @transform_2(%arg0: i32) -> (i32, i32) {
    %c0_i32 = arith.constant 0 : i32
    %c0_i32_0 = arith.constant 0 : i32
    %c0_i32_1 = arith.constant 0 : i32
    return %c0_i32, %c0_i32_0 : i32, i32
  }
  func.func @transform_3(%arg0: i32) -> (i32, i32) {
    %c0_i32 = arith.constant 0 : i32
    %c0_i32_0 = arith.constant 0 : i32
    %c0_i32_1 = arith.constant 0 : i32
    return %c0_i32, %c0_i32_0 : i32, i32
  }
  func.func @transform_4(%arg0: i32) -> (i32, i32) {
    %c0_i32 = arith.constant 0 : i32
    %c0_i32_0 = arith.constant 0 : i32
    %c0_i32_1 = arith.constant 0 : i32
    return %c0_i32, %c0_i32_0 : i32, i32
  }
  func.func @transform_5(%arg0: i32) -> (i32, i32) {
    %c0_i32 = arith.constant 0 : i32
    %c0_i32_0 = arith.constant 0 : i32
    %c0_i32_1 = arith.constant 0 : i32
    return %c0_i32, %c0_i32_0 : i32, i32
  }
  func.func @transform_6(%arg0: i32) -> (i32, i32) {
    %c0_i32 = arith.constant 0 : i32
    %c0_i32_0 = arith.constant 0 : i32
    %c0_i32_1 = arith.constant 0 : i32
    return %c0_i32, %c0_i32_0 : i32, i32
  }
  func.func @transform_7(%arg0: i32) -> (i32, i32) {
    %c0_i32 = arith.constant 0 : i32
    %c0_i32_0 = arith.constant 0 : i32
    %c0_i32_1 = arith.constant 0 : i32
    return %c0_i32, %c0_i32_0 : i32, i32
  }
  func.func @transform_8(%arg0: i32) -> (i32, i32) {
    %c0_i32 = arith.constant 0 : i32
    %c0_i32_0 = arith.constant 0 : i32
    %c0_i32_1 = arith.constant 0 : i32
    return %c0_i32, %c0_i32_0 : i32, i32
  }
  func.func @transform_9(%arg0: i32) -> (i32, i32) {
    %c0_i32 = arith.constant 0 : i32
    %c0_i32_0 = arith.constant 0 : i32
    return %c0_i32, %arg0 : i32, i32
  }
}

</mosaic_0001>

<bundles_post_ra>
// kernel: mlp_forward.1
= control target key start
LH: loop header
LB: loop body
LE: loop exit
PB: predicated region body
PF: predicated region fallthrough
CT: control target
= control target key end

     0   :  { %vm196_vm0 = vcmask 1041408   ;;  %v4668_v0 = vmov 0   ;;  %vm147_vm1 = vcmask 31744   ;;  %s4658_s2 = inlined_call_operand.vmem [shape: bf16[256,1], index: 2, kind: input, shape index: {}]   ;;  %s4659_s0 = inlined_call_operand.vmem [shape: f32[4,128], index: 0, kind: input, shape index: {}]   ;;  %s4660_s1 = inlined_call_operand.vmem [shape: bf16[256,4], index: 1, kind: input, shape index: {}]   ;;  %s4661_s4 = inlined_call_operand.vmem [shape: bf16[256,1], index: 4, kind: input, shape index: {}]   ;;  %s4662_s6 = inlined_call_operand.vmem [shape: bf16[256,1], index: 6, kind: input, shape index: {}]   ;;  %s4663_s3 = inlined_call_operand.vmem [shape: bf16[256,256], index: 3, kind: input, shape index: {}]   ;;  %s4664_s8 = inlined_call_operand.vmem [shape: f32[3,1], index: 8, kind: input, shape index: {}]   ;;  %s4665_s5 = inlined_call_operand.vmem [shape: bf16[256,256], index: 5, kind: input, shape index: {}]   ;;  %s4666_s7 = inlined_call_operand.vmem [shape: bf16[3,256], index: 7, kind: input, shape index: {}]   ;;  %s4667_s9 = inlined_call_operand.vmem [shape: f32[3,128], index: 9, kind: output, shape index: {}]  }
   0x1   :  { %3259 = vset.pattern.permute.xlu1 %v4668_v0  ;;  %3258 = vset.pattern.permute.xlu0 %v4668_v0  ;;  %v407_v1 = vld [vmem:[%s4658_s2 + $0x78] sm:$0xf]  ;;  %v33_v3 = vld [vmem:[%s4659_s0] sm:$0xf]  ;;  %v408_v5 = vld [vmem:[%s4658_s2 + $0x7c] sm:$0xf] }
   0x2   :  { %v391_v2 = vld [vmem:[%s4658_s2 + $0x38] sm:$0xf]  ;;  %771 = vperm.xlu0 %3258, %v407_v1   ;;  %v34_v4 = vpack.c.bf16 %v33_v3, %v33_v3  ;;  %v392_v6 = vld [vmem:[%s4658_s2 + $0x3c] sm:$0xf]  ;;  %v3260_v7 = vld [vmem:[%s4660_s1] sm:$0xff]  }
   0x3   :  { %579 = vperm.xlu1 %3259, %v391_v2   ;;  %v3261_v9 = vld [vmem:[%s4660_s1 + $0x40] sm:$0xff]   ;;  %v3262_v10 = vld [vmem:[%s4660_s1 + $0x8] sm:$0xff]   ;;  %3220 = vmatprep.mubr.msk.bf16.mxu0 %vm147_vm1, %v3260_v7  ;;  %v405_v12 = vld [vmem:[%s4658_s2 + $0x70] sm:$0xf] }
   0x4   :  { %3254 = vmatprep.subr.msk.bf16.mxu0 %vm196_vm0, %v34_v4  ;;  %3255 = vmatprep.subr.msk.bf16.mxu1 %vm196_vm0, %v34_v4  ;;  %v198_v8 = vsel %vm196_vm0, %v34_v4, 0  ;;  %v3263_v11 = vld [vmem:[%s4660_s1 + $0x48] sm:$0xff]   ;;  %v406_v13 = vld [vmem:[%s4658_s2 + $0x74] sm:$0xf]  ;;  %v389_v17 = vld [vmem:[%s4658_s2 + $0x30] sm:$0xf] }
   0x5   :  { %3219 = vmatpush3.bf16.msra.mxu0 %v198_v8  ;;  %3253 = vmatpush3.bf16.msra.mxu1 %v198_v8  ;;  %v3264_v14 = vld [vmem:[%s4660_s1 + $0x10] sm:$0xff]   ;;  %v3266_v18 = vld [vmem:[%s4660_s1 + $0x18] sm:$0xff]   ;;  %v404_v20 = vld [vmem:[%s4658_s2 + $0x6c] sm:$0xf] }
   0x6   :  { %783 = vperm.xlu0 %3258, %v408_v5   ;;  %3236 = vmatprep.mubr.msk.bf16.mxu1 %vm147_vm1, %v3261_v9  ;;  %v3265_v15 = vld [vmem:[%s4660_s1 + $0x50] sm:$0xff]   ;;  %v3267_v19 = vld [vmem:[%s4660_s1 + $0x58] sm:$0xff]   ;;  %v403_v21 = vld [vmem:[%s4658_s2 + $0x68] sm:$0xf] }
   0x7   :  { %591 = vperm.xlu1 %3259, %v392_v6   ;;  %v390_v16 = vld [vmem:[%s4658_s2 + $0x34] sm:$0xf]  ;;  %v3268_v22 = vld [vmem:[%s4660_s1 + $0x20] sm:$0xff]   ;;  %v388_v24 = vld [vmem:[%s4658_s2 + $0x2c] sm:$0xf] }
   0x8   :  { %3221 = vmatmul.mubr.msk.bf16.vlgmr.msra.gmra.mxu0 %vm147_vm1, %v3262_v10  ;;  %3237 = vmatmul.mubr.msk.bf16.vlgmr.msra.gmra.mxu1 %vm147_vm1, %v3263_v11  ;;  %v3269_v23 = vld [vmem:[%s4660_s1 + $0x60] sm:$0xff]   ;;  %v387_v25 = vld [vmem:[%s4658_s2 + $0x28] sm:$0xf]  ;;  %v3272_v28 = vld [vmem:[%s4660_s1 + $0x30] sm:$0xff]  }
   0x9   :  { %3224 = vmatprep.mubr.msk.bf16.mxu0 %vm147_vm1, %v3264_v14  ;;  %3240 = vmatprep.mubr.msk.bf16.mxu1 %vm147_vm1, %v3265_v15  ;;  %v3270_v26 = vld [vmem:[%s4660_s1 + $0x28] sm:$0xff]   ;;  %v3273_v29 = vld [vmem:[%s4660_s1 + $0x70] sm:$0xff]   ;;  %v402_v30 = vld [vmem:[%s4658_s2 + $0x64] sm:$0xf] }
   0xa   :  { %747 = vperm.xlu0 %3258, %v405_v12   ;;  %v3271_v27 = vld [vmem:[%s4660_s1 + $0x68] sm:$0xff]   ;;  %v401_v31 = vld [vmem:[%s4658_s2 + $0x60] sm:$0xf]  ;;  %v386_v32 = vld [vmem:[%s4658_s2 + $0x24] sm:$0xf] }
   0xb   :  { %759 = vperm.xlu1 %3259, %v406_v13   ;;  %v385_v33 = vld [vmem:[%s4658_s2 + $0x20] sm:$0xf]  ;;  %v3274_v34 = vld [vmem:[%s4660_s1 + $0x38] sm:$0xff]   ;;  %v398_v40 = vld [vmem:[%s4658_s2 + $0x54] sm:$0xf] }
   0xc   :  { %v3275_v35 = vld [vmem:[%s4660_s1 + $0x78] sm:$0xff]   ;;  %v397_v41 = vld [vmem:[%s4658_s2 + $0x50] sm:$0xf]  ;;  %v382_v42 = vld [vmem:[%s4658_s2 + $0x14] sm:$0xf] }
   0xd   :  { %v400_v36 = vld [vmem:[%s4658_s2 + $0x5c] sm:$0xf]  ;;  %v399_v37 = vld [vmem:[%s4658_s2 + $0x58] sm:$0xf]  ;;  %v381_v43 = vld [vmem:[%s4658_s2 + $0x10] sm:$0xf] }
   0xe   :  { %555 = vperm.xlu0 %3258, %v389_v17   ;;  %v384_v38 = vld [vmem:[%s4658_s2 + $0x1c] sm:$0xf]  ;;  %v383_v39 = vld [vmem:[%s4658_s2 + $0x18] sm:$0xf]  ;;  %v396_v44 = vld [vmem:[%s4658_s2 + $0x4c] sm:$0xf] }
   0xf   :  { %567 = vperm.xlu1 %3259, %v390_v16   ;;  %v395_v45 = vld [vmem:[%s4658_s2 + $0x48] sm:$0xf]  ;;  %v380_v46 = vld [vmem:[%s4658_s2 + $0xc] sm:$0xf]  ;;  %v394_v48 = vld [vmem:[%s4658_s2 + $0x44] sm:$0xf] }
  0x10   :  { %3225 = vmatmul.mubr.msk.bf16.gmra.mxu0 %vm147_vm1, %v3266_v18  ;;  %3241 = vmatmul.mubr.msk.bf16.gmra.mxu1 %vm147_vm1, %v3267_v19  ;;  %v379_v47 = vld [vmem:[%s4658_s2 + $0x8] sm:$0xf]  ;;  %v393_v49 = vld [vmem:[%s4658_s2 + $0x40] sm:$0xf]  ;;  %v378_v50 = vld [vmem:[%s4658_s2 + $0x4] sm:$0xf] }
  0x11   :  { %3228 = vmatprep.mubr.msk.bf16.mxu0 %vm147_vm1, %v3268_v22  ;;  %3244 = vmatprep.mubr.msk.bf16.mxu1 %vm147_vm1, %v3269_v23  ;;  %v377_v51 = vld [vmem:[%s4658_s2] sm:$0xf]  ;;  %v1321_v52 = vld [vmem:[%s4661_s4 + $0x7c] sm:$0xf]  ;;  %v1320_v53 = vld [vmem:[%s4661_s4 + $0x78] sm:$0xf] }
  0x12   :  { %723 = vperm.xlu0 %3258, %v403_v21   ;;  %v1305_v54 = vld [vmem:[%s4661_s4 + $0x3c] sm:$0xf]  ;;  %v1304_v55 = vld [vmem:[%s4661_s4 + $0x38] sm:$0xf]  ;;  %v1319_v56 = vld [vmem:[%s4661_s4 + $0x74] sm:$0xf] }
  0x13   :  { %735 = vperm.xlu1 %3259, %v404_v20   ;;  %v1318_v57 = vld [vmem:[%s4661_s4 + $0x70] sm:$0xf]  ;;  %v1303_v58 = vld [vmem:[%s4661_s4 + $0x34] sm:$0xf]  ;;  %v1317_v60 = vld [vmem:[%s4661_s4 + $0x6c] sm:$0xf] }
  0x14   :  { %v1302_v59 = vld [vmem:[%s4661_s4 + $0x30] sm:$0xf]  ;;  %v1316_v61 = vld [vmem:[%s4661_s4 + $0x68] sm:$0xf]  ;;  %v1301_v62 = vld [vmem:[%s4661_s4 + $0x2c] sm:$0xf] }
  0x15   :  { %v1300_v63 = vld [vmem:[%s4661_s4 + $0x28] sm:$0xf]  ;;  %v1315_v1 = vld [vmem:[%s4661_s4 + $0x64] sm:$0xf]  ;;  %v1314_v2 = vld [vmem:[%s4661_s4 + $0x60] sm:$0xf] }
  0x16   :  { %531 = vperm.xlu0 %3258, %v387_v25   ;;  %v1299_v3 = vld [vmem:[%s4661_s4 + $0x24] sm:$0xf]  ;;  %v1298_v4 = vld [vmem:[%s4661_s4 + $0x20] sm:$0xf]  ;;  %v1313_v5 = vld [vmem:[%s4661_s4 + $0x5c] sm:$0xf] }
  0x17   :  { %543 = vperm.xlu1 %3259, %v388_v24   ;;  %v1312_v6 = vld [vmem:[%s4661_s4 + $0x58] sm:$0xf]  ;;  %v1297_v7 = vld [vmem:[%s4661_s4 + $0x1c] sm:$0xf]  ;;  %v1311_v9 = vld [vmem:[%s4661_s4 + $0x54] sm:$0xf] }
  0x18   :  { %3229 = vmatmul.mubr.msk.bf16.gmra.mxu0 %vm147_vm1, %v3270_v26  ;;  %3245 = vmatmul.mubr.msk.bf16.gmra.mxu1 %vm147_vm1, %v3271_v27  ;;  %v1296_v8 = vld [vmem:[%s4661_s4 + $0x18] sm:$0xf]  ;;  %v1310_v10 = vld [vmem:[%s4661_s4 + $0x50] sm:$0xf]  ;;  %v1295_v11 = vld [vmem:[%s4661_s4 + $0x14] sm:$0xf] }
  0x19   :  { %3232 = vmatprep.mubr.msk.bf16.mxu0 %vm147_vm1, %v3272_v28  ;;  %3248 = vmatprep.mubr.msk.bf16.mxu1 %vm147_vm1, %v3273_v29  ;;  %v1294_v12 = vld [vmem:[%s4661_s4 + $0x10] sm:$0xf]  ;;  %v1309_v13 = vld [vmem:[%s4661_s4 + $0x4c] sm:$0xf]  ;;  %v1308_v14 = vld [vmem:[%s4661_s4 + $0x48] sm:$0xf] }
  0x1a   :  { %699 = vperm.xlu0 %3258, %v401_v31   ;;  %v1293_v15 = vld [vmem:[%s4661_s4 + $0xc] sm:$0xf]  ;;  %v1292_v16 = vld [vmem:[%s4661_s4 + $0x8] sm:$0xf]  ;;  %v1307_v17 = vld [vmem:[%s4661_s4 + $0x44] sm:$0xf] }
  0x1b   :  { %711 = vperm.xlu1 %3259, %v402_v30   ;;  %v1306_v18 = vld [vmem:[%s4661_s4 + $0x40] sm:$0xf]  ;;  %v1291_v19 = vld [vmem:[%s4661_s4 + $0x4] sm:$0xf]  ;;  %v2234_v21 = vld [vmem:[%s4662_s6 + $0x7c] sm:$0xf] }
  0x1c   :  { %v1290_v20 = vld [vmem:[%s4661_s4] sm:$0xf]  ;;  %v2233_v22 = vld [vmem:[%s4662_s6 + $0x78] sm:$0xf]  ;;  %v2218_v23 = vld [vmem:[%s4662_s6 + $0x3c] sm:$0xf] }
  0x1d   :  { %v2217_v24 = vld [vmem:[%s4662_s6 + $0x38] sm:$0xf]  ;;  %v2232_v25 = vld [vmem:[%s4662_s6 + $0x74] sm:$0xf]  ;;  %v2231_v26 = vld [vmem:[%s4662_s6 + $0x70] sm:$0xf] }
  0x1e   :  { %507 = vperm.xlu0 %3258, %v385_v33   ;;  %v3278_v27 = vld [vmem:[%s4663_s3 + $0x4] ss:$8 sps:$4 sm:$0xff]   ;;  %v2216_v28 = vld [vmem:[%s4662_s6 + $0x34] sm:$0xf]  ;;  %v2215_v29 = vld [vmem:[%s4662_s6 + $0x30] sm:$0xf] }
  0x1f   :  { %519 = vperm.xlu1 %3259, %v386_v32   ;;  %v2230_v30 = vld [vmem:[%s4662_s6 + $0x6c] sm:$0xf]  ;;  %v2229_v31 = vld [vmem:[%s4662_s6 + $0x68] sm:$0xf] }
  0x20   :  { %3233 = vmatmul.mubr.msk.bf16.gmra.mxu0 %vm147_vm1, %v3274_v34  ;;  %3249 = vmatmul.mubr.msk.bf16.gmra.mxu1 %vm147_vm1, %v3275_v35  ;;  %v2214_v32 = vld [vmem:[%s4662_s6 + $0x2c] sm:$0xf]  ;;  %v2213_v33 = vld [vmem:[%s4662_s6 + $0x28] sm:$0xf]  ;;  %v2228_v34 = vld [vmem:[%s4662_s6 + $0x64] sm:$0xf] }
  0x21   :  { %1145 = vmatprep.mubr.bf16.mxu1 %v3278_v27  ;;  %v2227_v35 = vld [vmem:[%s4662_s6 + $0x60] sm:$0xf] }
  0x22   :  { %675 = vperm.xlu0 %3258, %v399_v37   ;;  %v2211_v37 = vld [vmem:[%s4662_s6 + $0x20] sm:$0xf] }
  0x23   :  { %687 = vperm.xlu1 %3259, %v400_v36   ;;  %v2212_v36 = vld [vmem:[%s4662_s6 + $0x24] sm:$0xf] }
  0x26   :  { %483 = vperm.xlu0 %3258, %v383_v39   ;;  %v2225_v39 = vld [vmem:[%s4662_s6 + $0x58] sm:$0xf] }
  0x27   :  { %495 = vperm.xlu1 %3259, %v384_v38   ;;  %v2226_v38 = vld [vmem:[%s4662_s6 + $0x5c] sm:$0xf] }
  0x2a   :  { %651 = vperm.xlu0 %3258, %v397_v41  }
  0x2b   :  { %663 = vperm.xlu1 %3259, %v398_v40  }
  0x2e   :  { %459 = vperm.xlu0 %3258, %v381_v43   ;;  %v2209_v43 = vld [vmem:[%s4662_s6 + $0x18] sm:$0xf] }
  0x2f   :  { %471 = vperm.xlu1 %3259, %v382_v42   ;;  %v2210_v42 = vld [vmem:[%s4662_s6 + $0x1c] sm:$0xf] }
  0x32   :  { %627 = vperm.xlu0 %3258, %v395_v45  }
  0x33   :  { %639 = vperm.xlu1 %3259, %v396_v44  }
  0x36   :  { %435 = vperm.xlu0 %3258, %v379_v47   ;;  %v2223_v47 = vld [vmem:[%s4662_s6 + $0x50] sm:$0xf] }
  0x37   :  { %447 = vperm.xlu1 %3259, %v380_v46   ;;  %v2224_v46 = vld [vmem:[%s4662_s6 + $0x54] sm:$0xf] }
  0x3a   :  { %603 = vperm.xlu0 %3258, %v393_v49   ;;  %v2207_v49 = vld [vmem:[%s4662_s6 + $0x10] sm:$0xf] }
  0x3b   :  { %615 = vperm.xlu1 %3259, %v394_v48   ;;  %v2208_v48 = vld [vmem:[%s4662_s6 + $0x14] sm:$0xf] }
  0x3e   :  { %411 = vperm.xlu0 %3258, %v377_v51  }
  0x3f   :  { %423 = vperm.xlu1 %3259, %v378_v50  }
  0x42   :  { %1684 = vperm.xlu0 %3258, %v1320_v53   ;;  %v2221_v53 = vld [vmem:[%s4662_s6 + $0x48] sm:$0xf] }
  0x43   :  { %1696 = vperm.xlu1 %3259, %v1321_v52   ;;  %v2222_v52 = vld [vmem:[%s4662_s6 + $0x4c] sm:$0xf] }
  0x46   :  { %1492 = vperm.xlu0 %3258, %v1304_v55  }
  0x47   :  { %1504 = vperm.xlu1 %3259, %v1305_v54  }
  0x4a   :  { %1660 = vperm.xlu0 %3258, %v1318_v57   ;;  %v2205_v57 = vld [vmem:[%s4662_s6 + $0x8] sm:$0xf] }
  0x4b   :  { %1672 = vperm.xlu1 %3259, %v1319_v56   ;;  %v2206_v56 = vld [vmem:[%s4662_s6 + $0xc] sm:$0xf] }
  0x4e   :  { %1468 = vperm.xlu0 %3258, %v1302_v59   ;;  %v2219_v59 = vld [vmem:[%s4662_s6 + $0x40] sm:$0xf] }
  0x4f   :  { %1480 = vperm.xlu1 %3259, %v1303_v58   ;;  %v2220_v58 = vld [vmem:[%s4662_s6 + $0x44] sm:$0xf] }
  0x52   :  { %1636 = vperm.xlu0 %3258, %v1316_v61  }
  0x53   :  { %1648 = vperm.xlu1 %3259, %v1317_v60  }
  0x56   :  { %1444 = vperm.xlu0 %3258, %v1300_v63   ;;  %v2203_v63 = vld [vmem:[%s4662_s6] sm:$0xf] }
  0x57   :  { %1456 = vperm.xlu1 %3259, %v1301_v62   ;;  %v2204_v62 = vld [vmem:[%s4662_s6 + $0x4] sm:$0xf] }
  0x5a   :  { %1612 = vperm.xlu0 %3258, %v1314_v2  }
  0x5b   :  { %1624 = vperm.xlu1 %3259, %v1315_v1  }
  0x5e   :  { %1420 = vperm.xlu0 %3258, %v1298_v4  }
  0x5f   :  { %1432 = vperm.xlu1 %3259, %v1299_v3   ;;  %v2748_v3 = vld [vmem:[%s4664_s8] sm:$0x7] }
  0x62   :  { %1588 = vperm.xlu0 %3258, %v1312_v6  }
  0x63   :  { %1600 = vperm.xlu1 %3259, %v1313_v5  }
  0x66   :  { %1396 = vperm.xlu0 %3258, %v1296_v8  }
  0x67   :  { %1408 = vperm.xlu1 %3259, %v1297_v7  }
  0x6a   :  { %1564 = vperm.xlu0 %3258, %v1310_v10  }
  0x6b   :  { %1576 = vperm.xlu1 %3259, %v1311_v9  }
  0x6e   :  { %1372 = vperm.xlu0 %3258, %v1294_v12  }
  0x6f   :  { %1384 = vperm.xlu1 %3259, %v1295_v11  }
  0x72   :  { %1540 = vperm.xlu0 %3258, %v1308_v14  }
  0x73   :  { %1552 = vperm.xlu1 %3259, %v1309_v13  }
  0x76   :  { %1348 = vperm.xlu0 %3258, %v1292_v16  }
  0x77   :  { %1360 = vperm.xlu1 %3259, %v1293_v15  }
  0x7a   :  { %1516 = vperm.xlu0 %3258, %v1306_v18  }
  0x7b   :  { %1528 = vperm.xlu1 %3259, %v1307_v17  }
  0x7d   :  { %v3745_v40 = vpop.permute.xlu0 %771 }
  0x7e   :  { %1324 = vperm.xlu0 %3258, %v1290_v20   ;;  %v3747_v41 = vpop.permute.xlu1 %579 }
  0x7f   :  { %1336 = vperm.xlu1 %3259, %v1291_v19  }
  0x81   :  { %v3755_v44 = vpop.permute.xlu0 %783 }
  0x82   :  { %2597 = vperm.xlu0 %3258, %v2233_v22   ;;  %v3757_v45 = vpop.permute.xlu1 %591 }
  0x83   :  { %2609 = vperm.xlu1 %3259, %v2234_v21  }
  0x85   :  { %v3771_v50 = vpop.permute.xlu0 %747 }
  0x86   :  { %2405 = vperm.xlu0 %3258, %v2217_v24   ;;  %v3773_v51 = vpop.permute.xlu1 %759  ;;  %v3373_v24 = vmov 839922192  }
  0x87   :  { %2417 = vperm.xlu1 %3259, %v2218_v23  }
  0x89   :  { %v3783_v55 = vpop.permute.xlu0 %555 }
  0x8a   :  { %2573 = vperm.xlu0 %3258, %v2231_v26   ;;  %v3781_v54 = vpop.permute.xlu1 %567  ;;  %v417_v26 = vlaneseq }
  0x8b   :  { %2585 = vperm.xlu1 %3259, %v2232_v25   ;;  %v415_v25 = vunpack.c.l.s4 %v3373_v24 }
  0x8d   :  { %v3799_v61 = vpop.permute.xlu0 %723 }
  0x8e   :  { %2381 = vperm.xlu0 %3258, %v2215_v29   ;;  %v3797_v60 = vpop.permute.xlu1 %735 }
  0x8f   :  { %2393 = vperm.xlu1 %3259, %v2216_v28  }
  0x91   :  { %v3809_v2 = vpop.permute.xlu0 %531 }
  0x92   :  { %2549 = vperm.xlu0 %3258, %v2229_v31   ;;  %v3807_v1 = vpop.permute.xlu1 %543 }
  0x93   :  { %2561 = vperm.xlu1 %3259, %v2230_v30  }
  0x95   :  { %v3816_v5 = vpop.permute.xlu0 %699 }
  0x96   :  { %2357 = vperm.xlu0 %3258, %v2213_v33   ;;  %v3814_v4 = vpop.permute.xlu1 %711  ;;  %v416_v33 = vunpack.c.0.s8 %v415_v25 }
  0x97   :  { %2369 = vperm.xlu1 %3259, %v2214_v32  }
  0x99   :  { %v3828_v11 = vpop.permute.xlu0 %507 }
  0x9a   :  { %2525 = vperm.xlu0 %3258, %v2227_v35   ;;  %v3826_v10 = vpop.permute.xlu1 %519 }
  0x9b   :  { %2537 = vperm.xlu1 %3259, %v2228_v34   ;;  %v418_v34 = vshrl.u32 %v417_v26, 7 }
  0x9d   :  { %v3844_v19 = vpop.permute.xlu0 %675 }
  0x9e   :  { %2333 = vperm.xlu0 %3258, %v2211_v37   ;;  %v3842_v18 = vpop.permute.xlu1 %687 }
  0x9f   :  { %2345 = vperm.xlu1 %3259, %v2212_v36  }
  0xa1   :  { %v3860_v30 = vpop.permute.xlu0 %483 }
  0xa2   :  { %2501 = vperm.xlu0 %3258, %v2225_v39   ;;  %v3858_v29 = vpop.permute.xlu1 %495  ;;  %v3870_v39 = vsub.s32 %v416_v33, %v418_v34 }
  0xa3   :  { %2513 = vperm.xlu1 %3259, %v2226_v38  }
  0xa6   :  { %2309 = vperm.xlu0 %3258, %v2209_v43   ;;  %v3874_v43 = vpop.permute.xlu0 %651 }
  0xa7   :  { %2321 = vperm.xlu1 %3259, %v2210_v42   ;;  %v3872_v42 = vpop.permute.xlu1 %663 }
  0xaa   :  { %2477 = vperm.xlu0 %3258, %v2223_v47  }
  0xab   :  { %2489 = vperm.xlu1 %3259, %v2224_v46  }
  0xae   :  { %2285 = vperm.xlu0 %3258, %v2207_v49  }
  0xaf   :  { %2297 = vperm.xlu1 %3259, %v2208_v48  }
  0xb2   :  { %2453 = vperm.xlu0 %3258, %v2221_v53   ;;  %v588_v53 = vrot.slane %v3747_v41, %v3870_v39 }
  0xb3   :  { %2465 = vperm.xlu1 %3259, %v2222_v52   ;;  %v780_v52 = vrot.slane %v3745_v40, %v3870_v39  ;;  %v564_v40 = vrot.slane %v3783_v55, %v3870_v39 }
  0xb6   :  { %2261 = vperm.xlu0 %3258, %v2205_v57   ;;  %v600_v57 = vrot.slane %v3757_v45, %v3870_v39  ;;  %v744_v45 = vrot.slane %v3797_v60, %v3870_v39  ;;  %v552_v60 = vrot.slane %v3807_v1, %v3870_v39 }
  0xb7   :  { %2273 = vperm.xlu1 %3259, %v2206_v56   ;;  %v792_v56 = vrot.slane %v3755_v44, %v3870_v39  ;;  %v3898_v44 = vpop.permute.xlu0 %459 }
  0xb8   :  { %v2849_v26 = vcombine.low %v588_v53, %v600_v57 }
  0xb9   :  { %v2857_v25 = vcombine.low %v780_v52, %v792_v56  ;;  %v4706_v52 = vmov 0  }
  0xba   :  { %2429 = vperm.xlu0 %3258, %v2219_v59   ;;  %v768_v59 = vrot.slane %v3773_v51, %v3870_v39 }
  0xbb   :  { %2441 = vperm.xlu1 %3259, %v2220_v58   ;;  %v756_v58 = vrot.slane %v3771_v50, %v3870_v39  ;;  %v732_v50 = vrot.slane %v3799_v61, %v3870_v39  ;;  %v540_v61 = vrot.slane %v3809_v2, %v3870_v39 }
  0xbd   :  { %v2856_v34 = vcombine.low %v756_v58, %v768_v59  ;;  %v2847_v58 = vcombine.low %v540_v61, %v552_v60 }
  0xbe   :  { %2237 = vperm.xlu0 %3258, %v2203_v63  }
  0xbf   :  { %2249 = vperm.xlu1 %3259, %v2204_v62   ;;  %v576_v62 = vrot.slane %v3781_v54, %v3870_v39 }
  0xc1   :  { %v2848_v55 = vcombine.low %v564_v40, %v576_v62 }
  0xc2   :  { %2751 = vperm.xlu0 %3258, %v2748_v3   ;;  %v3896_v3 = vpop.permute.xlu1 %471 }
  0xc8   :  { %v3818_v6 = vpop.f32.mrf.mxu0  ;;  %v3820_v7 = vpop.f32.mrf.mxu1 }
  0xc9   :  { %4699 = vst [vmem:[#allocation2_spill] sm:$0xff] %v3818_v6 }
  0xca   :  { %v3822_v8 = vpop.f32.mrf.mxu0  ;;  %v3824_v9 = vpop.f32.mrf.mxu1 }
  0xcb   :  { %4700 = vst [vmem:[#allocation3_spill] sm:$0xff] %v3822_v8  ;;  %4701 = vst [vmem:[#allocation4_spill] sm:$0xff] %v3824_v9 }
  0xcc   :  { %v3830_v12 = vpop.f32.mrf.mxu0  ;;  %v3832_v13 = vpop.f32.mrf.mxu1 }
  0xcd   :  { %4702 = vst [vmem:[#allocation5_spill] sm:$0xff] %v3830_v12  ;;  %4703 = vst [vmem:[#allocation6_spill] sm:$0xff] %v3832_v13  ;;  %v2855_v13 = vcombine.low %v732_v50, %v744_v45 }
  0xce   :  { %v3834_v14 = vpop.f32.mrf.mxu0  ;;  %v3836_v15 = vpop.f32.mrf.mxu1 }
  0xcf   :  { %4704 = vst [vmem:[#allocation7_spill] sm:$0xff] %v3834_v14  ;;  %4705 = vst [vmem:[#allocation8_spill] sm:$0xff] %v3836_v15 }
  0xd0   :  { %v3838_v16 = vpop.f32.mrf.mxu0  ;;  %v3840_v17 = vpop.f32.mrf.mxu1 }
  0xd2   :  { %v3846_v20 = vpop.f32.mrf.mxu0  ;;  %v3848_v21 = vpop.f32.mrf.mxu1 }
  0xd4   :  { %v3850_v22 = vpop.f32.mrf.mxu0  ;;  %v3852_v23 = vpop.f32.mrf.mxu1 }
  0xd6   :  { %v3854_v27 = vpop.f32.mrf.mxu0  ;;  %v3856_v28 = vpop.f32.mrf.mxu1 }
  0xd8   :  { %v3862_v31 = vpop.f32.mrf.mxu0  ;;  %v3246_v32 = vpop.f32.mrf.mxu1 }
  0xda   :  { %v3864_v35 = vpop.f32.mrf.mxu0  ;;  %v3866_v36 = vpop.f32.mrf.mxu1 }
  0xdc   :  { %v3868_v37 = vpop.f32.mrf.mxu0  ;;  %v3247_v38 = vpop.f32.mrf.mxu1 }
  0xdd   :  { %v374_v0 = vpack.c.bf16 %v3247_v38, %v3246_v32  ;;  %v640_v32 = vpop.permute.xlu1 %639  ;;  %v628_v38 = vpop.permute.xlu0 %627 }
  0xde   :  { %v3876_v46 = vpop.f32.mrf.mxu0  ;;  %v3878_v47 = vpop.f32.mrf.mxu1 }
  0xdf   :  { %v902_v57 = vadd.bf16 %v2855_v13, %v374_v0  ;;  %v373_v2 = vpack.c.bf16 %v3878_v47, %v3866_v36  ;;  %v684_v0 = vrot.slane %v3844_v19, %v3870_v39  ;;  %v365_v13 = vpack.c.bf16 %v3876_v46, %v3864_v35 }
  0xe0   :  { %v3234_v48 = vpop.f32.mrf.mxu0  ;;  %v3250_v49 = vpop.f32.mrf.mxu1  ;;  %v492_v19 = vrot.slane %v3860_v30, %v3870_v39  ;;  %v672_v35 = vrot.slane %v3872_v42, %v3870_v39  ;;  %v660_v46 = vrot.slane %v3874_v43, %v3870_v39  ;;  %v480_v42 = vrot.slane %v3896_v3, %v3870_v39  ;;  %v4707_v3 = vld [vmem:[#allocation6_spill] sm:$0xff] }
  0xe1   :  { %v448_v36 = vpop.permute.xlu1 %447  ;;  %v918_v47 = vmax.bf16 %v4706_v52, %v902_v57  ;;  %v468_v43 = vrot.slane %v3898_v44, %v3870_v39 }
  0xe2   :  { %v282_v63 = vpop.f32.mrf.mxu0  ;;  %v346_v41 = vpop.f32.mrf.mxu1  ;;  %v2852_v45 = vcombine.low %v660_v46, %v672_v35  ;;  %v3285_v35 = vld [vmem:[%s4663_s3 + $0x34] ss:$8 sps:$4 sm:$0xff]   ;;  %v3287_v46 = vld [vmem:[%s4663_s3 + $0x30] ss:$8 sps:$4 sm:$0xff]  }
  0xe4   :  { %v3235_v24 = vpop.f32.mrf.mxu0  ;;  %v3251_v51 = vpop.f32.mrf.mxu1 }
  0xe5   :  { %v368_v54 = vpack.c.bf16 %v3235_v24, %v3234_v48  ;;  %v376_v33 = vpack.c.bf16 %v3251_v51, %v3250_v49  ;;  %v720_v48 = vrot.slane %v3814_v4, %v3870_v39  ;;  %v708_v49 = vrot.slane %v3816_v5, %v3870_v39  ;;  %v616_v50 = vpop.permute.xlu1 %615 }
  0xe6   :  { %v285_v14 = vpop.f32.mrf.mxu0  ;;  %v349_v8 = vpop.f32.mrf.mxu1  ;;  %v528_v5 = vrot.slane %v3826_v10, %v3870_v39  ;;  %v624_v60 = vrot.slane %v616_v50, %v3870_v39  ;;  %v3306_v50 = vld [vmem:[%s4663_s3 + $0xa4] ss:$8 sps:$4 sm:$0xff]  }
  0xe7   :  { %v896_v15 = vadd.bf16 %v2849_v26, %v368_v54  ;;  %v904_v9 = vadd.bf16 %v2857_v25, %v376_v33  ;;  %v367_v12 = vpack.c.bf16 %v285_v14, %v282_v63  ;;  %v375_v6 = vpack.c.bf16 %v349_v8, %v346_v41  ;;  %v436_v10 = vpop.permute.xlu0 %435 }
  0xe8   :  { %v366_v14 = vpack.c.bf16 %v3868_v37, %v3862_v31  ;;  %v370_v25 = vpack.c.bf16 %v4707_v3, %v3820_v7  ;;  %v2844_v54 = vcombine.low %v468_v43, %v480_v42  ;;  %v456_v33 = vrot.slane %v448_v36, %v3870_v39  ;;  %v3299_v42 = vld [vmem:[%s4663_s3 + $0x70] ss:$8 sps:$4 sm:$0xff]   ;;  %v3300_v43 = vld [vmem:[%s4663_s3 + $0x84] ss:$8 sps:$4 sm:$0xff]   ;;  %v3314_v3 = vld [vmem:[%s4663_s3 + $0xc0] ss:$8 sps:$4 sm:$0xff]  }
  0xe9   :  { %v912_v53 = vmax.bf16 %v4706_v52, %v896_v15  ;;  %v903_v56 = vadd.bf16 %v2856_v34, %v375_v6  ;;  %v920_v8 = vmax.bf16 %v4706_v52, %v904_v9  ;;  %v895_v1 = vadd.bf16 %v2848_v55, %v367_v12 }
  0xea   :  { %v516_v6 = vrot.slane %v3828_v11, %v3870_v39  ;;  %v2854_v9 = vcombine.low %v708_v49, %v720_v48  ;;  %v696_v15 = vrot.slane %v3842_v18, %v3870_v39  ;;  %v894_v12 = vadd.bf16 %v2847_v58, %v366_v14 }
  0xeb   :  { %2972 = vmatprep.subr.bf16.mxu1 %v920_v8  ;;  %v919_v4 = vmax.bf16 %v4706_v52, %v903_v56  ;;  %v911_v31 = vmax.bf16 %v4706_v52, %v895_v1  ;;  %v372_v11 = vpack.c.bf16 %v3852_v23, %v3840_v17  ;;  %v504_v18 = vrot.slane %v3858_v29, %v3870_v39  ;;  %v604_v24 = vpop.permute.xlu0 %603  ;;  %v4710_v56 = vld [vmem:[#allocation4_spill] sm:$0xff] }
  0xec   :  { %2973 = vmatpush3.bf16.msra.mxu1 %v912_v53  ;;  %v901_v37 = vadd.bf16 %v2854_v9, %v373_v2  ;;  %v2846_v59 = vcombine.low %v516_v6, %v528_v5  ;;  %v2853_v62 = vcombine.low %v684_v0, %v696_v15  ;;  %v364_v17 = vpack.c.bf16 %v3850_v22, %v3838_v16  ;;  %v4711_v8 = vld [vmem:[#allocation8_spill] sm:$0xff]  ;;  %v4712_v6 = vld [vmem:[#allocation3_spill] sm:$0xff] }
  0xed   :  { %2974 = vmatprep.subr.bf16.mxu1 %v919_v4  ;;  %v910_v23 = vmax.bf16 %v4706_v52, %v894_v12  ;;  %v371_v29 = vpack.c.bf16 %v3856_v28, %v3848_v21  ;;  %v2845_v41 = vcombine.low %v492_v19, %v504_v18  ;;  %v648_v16 = vrot.slane %v640_v32, %v3870_v39  ;;  %v424_v32 = vpop.permute.xlu1 %423  ;;  %v4713_v9 = vld [vmem:[#allocation7_spill] sm:$0xff]  ;;  %v3281_v18 = vld [vmem:[%s4663_s3 + $0x10] ss:$8 sps:$4 sm:$0xff]  }
  0xee   :  { %v893_v40 = vadd.bf16 %v2846_v59, %v365_v13  ;;  %v900_v63 = vadd.bf16 %v2853_v62, %v372_v11  ;;  %v917_v30 = vmax.bf16 %v4706_v52, %v901_v37  ;;  %v636_v22 = vrot.slane %v628_v38, %v3870_v39  ;;  %v3279_v59 = vld [vmem:[%s4663_s3 + $0x14] ss:$8 sps:$4 sm:$0xff]   ;;  %v3282_v19 = vld [vmem:[%s4663_s3 + $0x24] ss:$8 sps:$4 sm:$0xff]   ;;  %v3284_v62 = vld [vmem:[%s4663_s3 + $0x20] ss:$8 sps:$4 sm:$0xff]  }
  0xef   :  { %v892_v51 = vadd.bf16 %v2845_v41, %v364_v17  ;;  %v363_v21 = vpack.c.bf16 %v3854_v27, %v3846_v20  ;;  %v899_v26 = vadd.bf16 %v2852_v45, %v371_v29  ;;  %v444_v34 = vrot.slane %v436_v10, %v3870_v39  ;;  %v4708_v20 = vld [vmem:[#allocation2_spill] sm:$0xff]  ;;  %v4709_v27 = vld [vmem:[#allocation5_spill] sm:$0xff]  ;;  %v412_v38 = vpop.permute.xlu0 %411 }
  0xf0   :  { %2975 = vmatpush3.bf16.msra.mxu1 %v911_v31  ;;  %v909_v28 = vmax.bf16 %v4706_v52, %v893_v40  ;;  %v916_v44 = vmax.bf16 %v4706_v52, %v900_v63  ;;  %v2851_v55 = vcombine.low %v636_v22, %v648_v16  ;;  %v612_v61 = vrot.slane %v604_v24, %v3870_v39  ;;  %v3288_v17 = vld [vmem:[%s4663_s3 + $0x44] ss:$8 sps:$4 sm:$0xff]   ;;  %v3291_v40 = vld [vmem:[%s4663_s3 + $0x54] ss:$8 sps:$4 sm:$0xff]   ;;  %v3293_v63 = vld [vmem:[%s4663_s3 + $0x50] ss:$8 sps:$4 sm:$0xff]  }
  0xf1   :  { %2976 = vmatprep.subr.bf16.mxu1 %v918_v47  ;;  %v362_v48 = vpack.c.bf16 %v4709_v27, %v4708_v20  ;;  %v908_v7 = vmax.bf16 %v4706_v52, %v892_v51  ;;  %v891_v49 = vadd.bf16 %v2844_v54, %v363_v21  ;;  %v369_v14 = vpack.c.bf16 %v4711_v8, %v4710_v56  ;;  %v3276_v47 = vld [vmem:[%s4663_s3] ss:$8 sps:$4 sm:$0xff]   ;;  %v3294_v29 = vld [vmem:[%s4663_s3 + $0x64] ss:$8 sps:$4 sm:$0xff]   ;;  %v3297_v41 = vld [vmem:[%s4663_s3 + $0x74] ss:$8 sps:$4 sm:$0xff]  }
  0xf2   :  { %v898_v53 = vadd.bf16 %v2851_v55, %v370_v25  ;;  %v915_v1 = vmax.bf16 %v4706_v52, %v899_v26  ;;  %v2843_v57 = vcombine.low %v444_v34, %v456_v33  ;;  %v432_v2 = vrot.slane %v424_v32, %v3870_v39  ;;  %v3302_v45 = vld [vmem:[%s4663_s3 + $0x80] ss:$8 sps:$4 sm:$0xff]   ;;  %v3303_v16 = vld [vmem:[%s4663_s3 + $0x94] ss:$8 sps:$4 sm:$0xff]   ;;  %v3305_v22 = vld [vmem:[%s4663_s3 + $0x90] ss:$8 sps:$4 sm:$0xff]  }
  0xf3   :  { %v420_v4 = vrot.slane %v412_v38, %v3870_v39  ;;  %v2850_v58 = vcombine.low %v612_v61, %v624_v60  ;;  %v361_v15 = vpack.c.bf16 %v4713_v9, %v4712_v6  ;;  %v907_v0 = vmax.bf16 %v4706_v52, %v891_v49  ;;  %v3308_v24 = vld [vmem:[%s4663_s3 + $0xa0] ss:$8 sps:$4 sm:$0xff]   ;;  %v3309_v51 = vld [vmem:[%s4663_s3 + $0xb4] ss:$8 sps:$4 sm:$0xff]   ;;  %v3311_v21 = vld [vmem:[%s4663_s3 + $0xb0] ss:$8 sps:$4 sm:$0xff]  }
  0xf4   :  { %2977 = vmatpush3.bf16.msra.mxu1 %v910_v23  ;;  %v890_v5 = vadd.bf16 %v2843_v57, %v362_v48  ;;  %v914_v13 = vmax.bf16 %v4706_v52, %v898_v53  ;;  %v3290_v23 = vld [vmem:[%s4663_s3 + $0x40] ss:$8 sps:$4 sm:$0xff]   ;;  %v3315_v25 = vld [vmem:[%s4663_s3 + $0xd4] ss:$8 sps:$4 sm:$0xff]   ;;  %v3317_v26 = vld [vmem:[%s4663_s3 + $0xd0] ss:$8 sps:$4 sm:$0xff]  }
  0xf5   :  { %2978 = vmatprep.subr.bf16.mxu1 %v917_v30  ;;  %v897_v12 = vadd.bf16 %v2850_v58, %v369_v14  ;;  %v2842_v31 = vcombine.low %v420_v4, %v432_v2  ;;  %v3296_v30 = vld [vmem:[%s4663_s3 + $0x60] ss:$8 sps:$4 sm:$0xff]   ;;  %v3321_v33 = vld [vmem:[%s4663_s3 + $0xf4] ss:$8 sps:$4 sm:$0xff]   ;;  %v3323_v34 = vld [vmem:[%s4663_s3 + $0xf0] ss:$8 sps:$4 sm:$0xff]  }
  0xf6   :  { %v906_v36 = vmax.bf16 %v4706_v52, %v890_v5  ;;  %v3320_v54 = vld [vmem:[%s4663_s3 + $0xe0] ss:$8 sps:$4 sm:$0xff]  }
  0xf7   :  { %v889_v10 = vadd.bf16 %v2842_v31, %v361_v15  ;;  %v913_v11 = vmax.bf16 %v4706_v52, %v897_v12 }
  0xf8   :  { %2979 = vmatpush3.bf16.msra.mxu1 %v909_v28  ;;  %v3312_v28 = vld [vmem:[%s4663_s3 + $0xc4] ss:$8 sps:$4 sm:$0xff]  }
  0xf9   :  { %2980 = vmatprep.subr.bf16.mxu1 %v916_v44  ;;  %v905_v37 = vmax.bf16 %v4706_v52, %v889_v10  ;;  %v3318_v44 = vld [vmem:[%s4663_s3 + $0xe4] ss:$8 sps:$4 sm:$0xff]  }
  0xfc   :  { %2981 = vmatpush3.bf16.msra.mxu1 %v908_v7 }
  0xfd   :  { %2982 = vmatprep.subr.bf16.mxu1 %v915_v1 }
 0x100   :  { %2983 = vmatpush3.bf16.msra.mxu1 %v907_v0 }
 0x101   :  { %2984 = vmatprep.subr.bf16.mxu1 %v914_v13 }
 0x104   :  { %2985 = vmatpush3.bf16.msra.mxu1 %v906_v36 }
 0x105   :  { %2986 = vmatprep.subr.bf16.mxu1 %v913_v11 }
 0x108   :  { %2987 = vmatpush3.bf16.msra.mxu1 %v905_v37 }
 0x10b   :  { %1146 = vmatmul.mubr.bf16.vlgmr.msra.gmra.mxu1 %v3276_v47 }
 0x10c   :  { %1153 = vmatprep.mubr.bf16.mxu1 %v3279_v59  ;;  %v3326_v59 = vld [vmem:[%s4665_s5 + $0x4] ss:$8 sps:$4 sm:$0xff]  }
 0x10d   :  { %2058 = vmatprep.mubr.bf16.mxu0 %v3326_v59 }
 0x113   :  { %1154 = vmatmul.mubr.bf16.gmra.mxu1 %v3281_v18 }
 0x114   :  { %1161 = vmatprep.mubr.bf16.mxu1 %v3282_v19 }
 0x11b   :  { %1162 = vmatmul.mubr.bf16.gmra.mxu1 %v3284_v62 }
 0x11c   :  { %1169 = vmatprep.mubr.bf16.mxu1 %v3285_v35 }
 0x123   :  { %1170 = vmatmul.mubr.bf16.gmra.mxu1 %v3287_v46 }
 0x124   :  { %1177 = vmatprep.mubr.bf16.mxu1 %v3288_v17 }
 0x12b   :  { %1178 = vmatmul.mubr.bf16.gmra.mxu1 %v3290_v23 }
 0x12c   :  { %1185 = vmatprep.mubr.bf16.mxu1 %v3291_v40 }
 0x133   :  { %1186 = vmatmul.mubr.bf16.gmra.mxu1 %v3293_v63 }
 0x134   :  { %1193 = vmatprep.mubr.bf16.mxu1 %v3294_v29 }
 0x13b   :  { %1194 = vmatmul.mubr.bf16.gmra.mxu1 %v3296_v30 }
 0x13c   :  { %1201 = vmatprep.mubr.bf16.mxu1 %v3297_v41 }
 0x143   :  { %1202 = vmatmul.mubr.bf16.gmra.mxu1 %v3299_v42 }
 0x144   :  { %1209 = vmatprep.mubr.bf16.mxu1 %v3300_v43 }
 0x14b   :  { %1210 = vmatmul.mubr.bf16.gmra.mxu1 %v3302_v45 }
 0x14c   :  { %1217 = vmatprep.mubr.bf16.mxu1 %v3303_v16 }
 0x153   :  { %1218 = vmatmul.mubr.bf16.gmra.mxu1 %v3305_v22 }
 0x154   :  { %1225 = vmatprep.mubr.bf16.mxu1 %v3306_v50 }
 0x15b   :  { %1226 = vmatmul.mubr.bf16.gmra.mxu1 %v3308_v24 }
 0x15c   :  { %1233 = vmatprep.mubr.bf16.mxu1 %v3309_v51  ;;  %v4116_v51 = vpop.permute.xlu1 %1696 }
 0x163   :  { %1234 = vmatmul.mubr.bf16.gmra.mxu1 %v3311_v21  ;;  %v4118_v21 = vpop.permute.xlu0 %1684 }
 0x164   :  { %1241 = vmatprep.mubr.bf16.mxu1 %v3312_v28 }
 0x16b   :  { %1242 = vmatmul.mubr.bf16.gmra.mxu1 %v3314_v3 }
 0x16c   :  { %1249 = vmatprep.mubr.bf16.mxu1 %v3315_v25 }
 0x173   :  { %1250 = vmatmul.mubr.bf16.gmra.mxu1 %v3317_v26 }
 0x174   :  { %1257 = vmatprep.mubr.bf16.mxu1 %v3318_v44 }
 0x17b   :  { %1258 = vmatmul.mubr.bf16.gmra.mxu1 %v3320_v54  ;;  %v4124_v54 = vpop.permute.xlu1 %1504 }
 0x17c   :  { %1265 = vmatprep.mubr.bf16.mxu1 %v3321_v33  ;;  %v4126_v33 = vpop.permute.xlu0 %1492 }
 0x183   :  { %1266 = vmatmul.mubr.bf16.gmra.mxu1 %v3323_v34 }
 0x1cb   :  { %v2988_v55 = vpop.f32.mrf.mxu1 }
 0x1cd   :  { %v2989_v60 = vpop.f32.mrf.mxu1 }
 0x1ce   :  { %v4071_v61 = vadd.f32 %v2989_v60, %v2988_v55 }
 0x1cf   :  { %v2991_v20 = vpop.f32.mrf.mxu1 }
 0x1d0   :  { %4714 = vst [vmem:[#allocation6_spill] sm:$0xff] %v4071_v61 }
 0x1d1   :  { %v2992_v27 = vpop.f32.mrf.mxu1 }
 0x1d2   :  { %v4073_v48 = vadd.f32 %v2992_v27, %v2991_v20 }
 0x1d3   :  { %v2994_v7 = vpop.f32.mrf.mxu1 }
 0x1d4   :  { %4715 = vst [vmem:[#allocation2_spill] sm:$0xff] %v4073_v48  ;;  %v1513_v48 = vrot.slane %v4124_v54, %v3870_v39 }
 0x1d5   :  { %v2995_v32 = vpop.f32.mrf.mxu1 }
 0x1d6   :  { %v4077_v38 = vadd.f32 %v2995_v32, %v2994_v7  ;;  %v4132_v7 = vpop.permute.xlu1 %1672  ;;  %v4134_v32 = vpop.permute.xlu0 %1660 }
 0x1d7   :  { %v2997_v53 = vpop.f32.mrf.mxu1 }
 0x1d8   :  { %4716 = vst [vmem:[#allocation5_spill] sm:$0xff] %v4077_v38 }
 0x1d9   :  { %v2998_v56 = vpop.f32.mrf.mxu1 }
 0x1da   :  { %v4079_v8 = vadd.f32 %v2998_v56, %v2997_v53 }
 0x1db   :  { %v3000_v14 = vpop.f32.mrf.mxu1 }
 0x1dc   :  { %4717 = vst [vmem:[#allocation4_spill] sm:$0xff] %v4079_v8  ;;  %v1705_v8 = vrot.slane %v4116_v51, %v3870_v39 }
 0x1dd   :  { %v3001_v57 = vpop.f32.mrf.mxu1 }
 0x1de   :  { %v4083_v2 = vadd.f32 %v3001_v57, %v3000_v14 }
 0x1df   :  { %v3003_v4 = vpop.f32.mrf.mxu1 }
 0x1e0   :  { %4718 = vst [vmem:[#allocation8_spill] sm:$0xff] %v4083_v2  ;;  %v1681_v2 = vrot.slane %v4132_v7, %v3870_v39 }
 0x1e1   :  { %v3004_v58 = vpop.f32.mrf.mxu1 }
 0x1e2   :  { %v4085_v5 = vadd.f32 %v3004_v58, %v3003_v4 }
 0x1e3   :  { %v3006_v6 = vpop.f32.mrf.mxu1 }
 0x1e4   :  { %4719 = vst [vmem:[#allocation3_spill] sm:$0xff] %v4085_v5  ;;  %v1669_v5 = vrot.slane %v4134_v32, %v3870_v39 }
 0x1e5   :  { %v3007_v15 = vpop.f32.mrf.mxu1 }
 0x1e6   :  { %v4089_v0 = vadd.f32 %v3007_v15, %v3006_v6  ;;  %v4142_v6 = vpop.permute.xlu1 %1480  ;;  %v4144_v15 = vpop.permute.xlu0 %1468 }
 0x1e7   :  { %v3009_v12 = vpop.f32.mrf.mxu1  ;;  %v1477_v7 = vrot.slane %v4144_v15, %v3870_v39 }
 0x1e8   :  { %4720 = vst [vmem:[#allocation7_spill] sm:$0xff] %v4089_v0 }
 0x1e9   :  { %v3010_v13 = vpop.f32.mrf.mxu1 }
 0x1ea   :  { %v4091_v31 = vadd.f32 %v3010_v13, %v3009_v12  ;;  %v4154_v59 = vpop.permute.xlu1 %1648 }
 0x1eb   :  { %v3012_v36 = vpop.f32.mrf.mxu1  ;;  %v1657_v32 = vrot.slane %v4154_v59, %v3870_v39 }
 0x1ec   :  { %4721 = vst [vmem:[#allocation9_spill] sm:$0xff] %v4091_v31 }
 0x1ed   :  { %v3013_v11 = vpop.f32.mrf.mxu1 }
 0x1ee   :  { %v4095_v37 = vadd.f32 %v3013_v11, %v3012_v36 }
 0x1ef   :  { %v3015_v47 = vpop.f32.mrf.mxu1 }
 0x1f0   :  { %4722 = vst [vmem:[#allocation10_spill] sm:$0xff] %v4095_v37 }
 0x1f1   :  { %v3016_v18 = vpop.f32.mrf.mxu1 }
 0x1f2   :  { %v4100_v19 = vadd.f32 %v3016_v18, %v3015_v47  ;;  %v4156_v18 = vpop.permute.xlu0 %1636 }
 0x1f3   :  { %v3018_v62 = vpop.f32.mrf.mxu1 }
 0x1f4   :  { %4723 = vst [vmem:[#allocation11_spill] sm:$0xff] %v4100_v19 }
 0x1f5   :  { %v3019_v46 = vpop.f32.mrf.mxu1 }
 0x1f6   :  { %v4104_v17 = vadd.f32 %v3019_v46, %v3018_v62 }
 0x1f7   :  { %v3021_v23 = vpop.f32.mrf.mxu1 }
 0x1f9   :  { %v3022_v40 = vpop.f32.mrf.mxu1 }
 0x1fa   :  { %v4106_v63 = vadd.f32 %v3022_v40, %v3021_v23  ;;  %v4164_v40 = vpop.permute.xlu1 %1456 }
 0x1fb   :  { %v3024_v29 = vpop.f32.mrf.mxu1 }
 0x1fd   :  { %v3025_v41 = vpop.f32.mrf.mxu1 }
 0x1fe   :  { %v4110_v42 = vadd.f32 %v3025_v41, %v3024_v29  ;;  %v4166_v29 = vpop.permute.xlu0 %1444 }
 0x1ff   :  { %v3027_v43 = vpop.f32.mrf.mxu1 }
 0x201   :  { %v3028_v45 = vpop.f32.mrf.mxu1 }
 0x202   :  { %v4112_v16 = vadd.f32 %v3028_v45, %v3027_v43 }
 0x203   :  { %v3030_v22 = vpop.f32.mrf.mxu1 }
 0x205   :  { %v3031_v24 = vpop.f32.mrf.mxu1 }
 0x206   :  { %v4120_v28 = vadd.f32 %v3031_v24, %v3030_v22  ;;  %v4174_v22 = vpop.permute.xlu1 %1624  ;;  %v4176_v24 = vpop.permute.xlu0 %1612 }
 0x207   :  { %v3033_v3 = vpop.f32.mrf.mxu1 }
 0x209   :  { %v3034_v25 = vpop.f32.mrf.mxu1 }
 0x20a   :  { %v4122_v26 = vadd.f32 %v3034_v25, %v3033_v3 }
 0x20b   :  { %v3036_v44 = vpop.f32.mrf.mxu1 }
 0x20d   :  { %v3037_v55 = vpop.f32.mrf.mxu1 }
 0x20e   :  { %v4130_v60 = vadd.f32 %v3037_v55, %v3036_v44  ;;  %v4178_v55 = vpop.permute.xlu1 %1432 }
 0x20f   :  { %v3039_v20 = vpop.f32.mrf.mxu1 }
 0x210   :  { %4724 = vst [vmem:[#allocation12_spill] sm:$0xff] %v4130_v60  ;;  %v1501_v60 = vrot.slane %v4126_v33, %v3870_v39 }
 0x211   :  { %v3040_v27 = vpop.f32.mrf.mxu1 }
 0x212   :  { %v4136_v53 = vadd.f32 %v3040_v27, %v3039_v20  ;;  %v4180_v20 = vpop.permute.xlu0 %1420  ;;  %v2897_v31 = vcombine.low %v1501_v60, %v1513_v48 }
 0x213   :  { %v3042_v56 = vpop.f32.mrf.mxu1 }
 0x214   :  { %4725 = vst [vmem:[#allocation13_spill] sm:$0xff] %v4136_v53 }
 0x215   :  { %v3043_v57 = vpop.f32.mrf.mxu1 }
 0x216   :  { %v4140_v4 = vadd.f32 %v3043_v57, %v3042_v56 }
 0x217   :  { %v3045_v58 = vpop.f32.mrf.mxu1 }
 0x218   :  { %4726 = vst [vmem:[#allocation14_spill] sm:$0xff] %v4140_v4 }
 0x219   :  { %v3046_v12 = vpop.f32.mrf.mxu1 }
 0x21a   :  { %v4146_v13 = vadd.f32 %v3046_v12, %v3045_v58  ;;  %v4182_v58 = vpop.permute.xlu1 %1600  ;;  %v4184_v12 = vpop.permute.xlu0 %1588 }
 0x21b   :  { %v4148_v36 = vpop.f32.mrf.mxu1 }
 0x21c   :  { %4727 = vst [vmem:[#allocation15_spill] sm:$0xff] %v4146_v13  ;;  %v1693_v13 = vrot.slane %v4118_v21, %v3870_v39  ;;  %v1489_v21 = vrot.slane %v4142_v6, %v3870_v39 }
 0x21d   :  { %v4152_v47 = vpop.f32.mrf.mxu1 }
 0x21e   :  { %v4186_v11 = vpop.permute.xlu1 %1408  ;;  %v4188_v9 = vpop.permute.xlu0 %1396  ;;  %v2896_v15 = vcombine.low %v1477_v7, %v1489_v21 }
 0x21f   :  { %v4158_v62 = vpop.f32.mrf.mxu1 }
 0x221   :  { %v4160_v46 = vpop.f32.mrf.mxu1 }
 0x222   :  { %v4190_v50 = vpop.permute.xlu1 %1576  ;;  %v4192_v34 = vpop.permute.xlu0 %1564 }
 0x223   :  { %v4162_v23 = vpop.f32.mrf.mxu1 }
 0x225   :  { %v4168_v41 = vpop.f32.mrf.mxu1 }
 0x226   :  { %v4206_v0 = vpop.permute.xlu1 %1384  ;;  %v4208_v54 = vpop.permute.xlu0 %1372 }
 0x227   :  { %v4170_v43 = vpop.f32.mrf.mxu1  ;;  %4728 = vst [vmem:[#allocation16_spill] sm:$0xff] %v4206_v0  ;;  %4729 = vst [vmem:[#allocation17_spill] sm:$0xff] %v4208_v54  ;;  %v1645_v0 = vrot.slane %v4156_v18, %v3870_v39  ;;  %v2905_v54 = vcombine.low %v1693_v13, %v1705_v8  ;;  %v1465_v8 = vrot.slane %v4164_v40, %v3870_v39 }
 0x229   :  { %v4172_v45 = vpop.f32.mrf.mxu1  ;;  %v2903_v59 = vcombine.low %v1645_v0, %v1657_v32 }
 0x22a   :  { %v4223_v60 = vpop.permute.xlu0 %1540  ;;  %v3059_v13 = vadd.f32 %v4172_v45, %v4170_v43  ;;  %v1597_v43 = vrot.slane %v4184_v12, %v3870_v39 }
 0x22b   :  { %v3060_v3 = vpop.f32.mrf.mxu1 }
 0x22d   :  { %v3061_v25 = vpop.f32.mrf.mxu1 }
 0x22f   :  { %v3063_v44 = vpop.f32.mrf.mxu1 }
 0x231   :  { %v3064_v27 = vpop.f32.mrf.mxu1 }
 0x233   :  { %v3066_v56 = vpop.f32.mrf.mxu1 }
 0x235   :  { %v3067_v57 = vpop.f32.mrf.mxu1 }
 0x236   :  { %v3068_v48 = vadd.f32 %v3067_v57, %v3066_v56  ;;  %v3053_v56 = vadd.f32 %v4160_v46, %v4158_v62  ;;  %v3050_v62 = vadd.f32 %v4152_v47, %v4148_v36  ;;  %v4733_v46 = vld [vmem:[#allocation11_spill] sm:$0xff] }
 0x237   :  { %v3069_v49 = vpop.f32.mrf.mxu1 }
 0x238   :  { %v1284_v7 = vpack.c.bf16 %v3053_v56, %v3050_v62 }
 0x239   :  { %v3070_v14 = vpop.f32.mrf.mxu1 }
 0x23b   :  { %v3072_v1 = vpop.f32.mrf.mxu1 }
 0x23d   :  { %v3073_v10 = vpop.f32.mrf.mxu1 }
 0x23e   :  { %v3074_v33 = vadd.f32 %v3073_v10, %v3072_v1  ;;  %v2904_v1 = vcombine.low %v1669_v5, %v1681_v2  ;;  %v1453_v2 = vrot.slane %v4166_v29, %v3870_v39  ;;  %v1633_v5 = vrot.slane %v4174_v22, %v3870_v39 }
 0x23f   :  { %v3075_v35 = vpop.f32.mrf.mxu1 }
 0x240   :  { %v2895_v22 = vcombine.low %v1453_v2, %v1465_v8 }
 0x241   :  { %v3076_v30 = vpop.f32.mrf.mxu1 }
 0x242   :  { %v3077_v38 = vadd.f32 %v3076_v30, %v3075_v35  ;;  %v3071_v30 = vadd.f32 %v3070_v14, %v3069_v49 }
 0x243   :  { %v3078_v61 = vpop.f32.mrf.mxu1 }
 0x244   :  { %v1288_v37 = vpack.c.bf16 %v3077_v38, %v3074_v33  ;;  %v4221_v38 = vpop.permute.xlu1 %1552  ;;  %v1287_v14 = vpack.c.bf16 %v3071_v30, %v3068_v48  ;;  %v1417_v33 = vrot.slane %v4186_v11, %v3870_v39  ;;  %v4736_v48 = vld [vmem:[#allocation16_spill] sm:$0xff] }
 0x245   :  { %v3079_v53 = vpop.f32.mrf.mxu1 }
 0x246   :  { %v3080_v51 = vadd.f32 %v3079_v53, %v3078_v61  ;;  %v4730_v61 = vpack.c.bf16 %v4122_v26, %v4120_v28  ;;  %v3065_v53 = vadd.f32 %v3064_v27, %v3063_v44  ;;  %v1815_v40 = vadd.bf16 %v2903_v59, %v1287_v14  ;;  %v4739_v14 = vld [vmem:[#allocation7_spill] sm:$0xff] }
 0x247   :  { %v3081_v4 = vpop.f32.mrf.mxu1  ;;  %v3056_v44 = vadd.f32 %v4168_v41, %v4162_v23  ;;  %v1405_v23 = vrot.slane %v4188_v9, %v3870_v39 }
 0x248   :  { %v1809_v49 = vadd.bf16 %v2897_v31, %v4730_v61  ;;  %v1621_v31 = vrot.slane %v4176_v24, %v3870_v39  ;;  %v1441_v24 = vrot.slane %v4178_v55, %v3870_v39  ;;  %v1361_v45 = vpop.permute.xlu1 %1360  ;;  %v4732_v55 = vpack.c.bf16 %v4106_v63, %v4104_v17 }
 0x249   :  { %v3082_v35 = vpop.f32.mrf.mxu1  ;;  %v1285_v57 = vpack.c.bf16 %v3059_v13, %v3056_v44  ;;  %v1585_v17 = vrot.slane %v4190_v50, %v3870_v39  ;;  %v1573_v63 = vrot.slane %v4192_v34, %v3870_v39  ;;  %v2893_v50 = vcombine.low %v1405_v23, %v1417_v33  ;;  %v4747_v44 = vld [vmem:[#allocation4_spill] sm:$0xff] }
 0x24a   :  { %v3083_v19 = vadd.f32 %v3082_v35, %v3081_v4  ;;  %v1816_v4 = vadd.bf16 %v2904_v1, %v1288_v37  ;;  %v4731_v37 = vpack.c.bf16 %v4112_v16, %v4110_v42  ;;  %v1825_v0 = vmax.bf16 %v4706_v52, %v1809_v49  ;;  %v4734_v35 = vld [vmem:[#allocation10_spill] sm:$0xff] }
 0x24b   :  { %v2902_v42 = vcombine.low %v1621_v31, %v1633_v5  ;;  %v1609_v16 = vrot.slane %v4182_v58, %v3870_v39  ;;  %v1807_v27 = vadd.bf16 %v2895_v22, %v4732_v55  ;;  %v4735_v30 = vpack.c.bf16 %v4733_v46, %v4734_v35  ;;  %v4745_v22 = vld [vmem:[#allocation14_spill] sm:$0xff]  ;;  %v4748_v55 = vld [vmem:[#allocation5_spill] sm:$0xff] }
 0x24c   :  { %v1289_v10 = vpack.c.bf16 %v3083_v19, %v3080_v51  ;;  %v3062_v19 = vadd.f32 %v3061_v25, %v3060_v3  ;;  %v1808_v26 = vadd.bf16 %v2896_v15, %v4731_v37  ;;  %v1832_v29 = vmax.bf16 %v4706_v52, %v1816_v4  ;;  %v1349_v25 = vpop.permute.xlu0 %1348  ;;  %v1529_v21 = vpop.permute.xlu1 %1528 }
 0x24d   :  { %v1429_v3 = vrot.slane %v4180_v20, %v3870_v39  ;;  %v2901_v41 = vcombine.low %v1597_v43, %v1609_v16  ;;  %v1823_v11 = vmax.bf16 %v4706_v52, %v1807_v27  ;;  %v1393_v34 = vrot.slane %v4736_v48, %v3870_v39  ;;  %v3338_v48 = vld [vmem:[%s4665_s5 + $0x40] ss:$8 sps:$4 sm:$0xff]  }
 0x24e   :  { %v1817_v6 = vadd.bf16 %v2905_v54, %v1289_v10  ;;  %v1286_v18 = vpack.c.bf16 %v3065_v53, %v3062_v19  ;;  %v1824_v20 = vmax.bf16 %v4706_v52, %v1808_v26  ;;  %v1831_v54 = vmax.bf16 %v4706_v52, %v1815_v40  ;;  %v4737_v10 = vld [vmem:[#allocation17_spill] sm:$0xff]  ;;  %v4741_v26 = vld [vmem:[#allocation3_spill] sm:$0xff] }
 0x24f   :  { %v2894_v12 = vcombine.low %v1429_v3, %v1441_v24  ;;  %v1813_v32 = vadd.bf16 %v2901_v41, %v1285_v57  ;;  %v1381_v36 = vrot.slane %v4737_v10, %v3870_v39  ;;  %v2900_v47 = vcombine.low %v1573_v63, %v1585_v17  ;;  %v4738_v53 = vld [vmem:[#allocation9_spill] sm:$0xff]  ;;  %v4753_v41 = vld [vmem:[#allocation2_spill] sm:$0xff] }
 0x250   :  { %v1833_v28 = vmax.bf16 %v4706_v52, %v1817_v6  ;;  %v1814_v58 = vadd.bf16 %v2902_v42, %v1286_v18  ;;  %v1517_v9 = vpop.permute.xlu0 %1516  ;;  %v1561_v61 = vrot.slane %v4221_v38, %v3870_v39  ;;  %v1549_v49 = vrot.slane %v4223_v60, %v3870_v39  ;;  %v4750_v57 = vld [vmem:[#allocation13_spill] sm:$0xff]  ;;  %v4754_v17 = vld [vmem:[#allocation6_spill] sm:$0xff] }
 0x251   :  { %v1806_v51 = vadd.bf16 %v2894_v12, %v4735_v30  ;;  %v4740_v4 = vpack.c.bf16 %v4738_v53, %v4739_v14  ;;  %v1812_v59 = vadd.bf16 %v2900_v47, %v1284_v7  ;;  %v1829_v8 = vmax.bf16 %v4706_v52, %v1813_v32  ;;  %v3332_v7 = vld [vmem:[%s4665_s5 + $0x20] ss:$8 sps:$4 sm:$0xff]   ;;  %v3333_v32 = vld [vmem:[%s4665_s5 + $0x34] ss:$8 sps:$4 sm:$0xff]   ;;  %v3341_v10 = vld [vmem:[%s4665_s5 + $0x50] ss:$8 sps:$4 sm:$0xff]  }
 0x252   :  { %3084 = vmatprep.subr.bf16.mxu0 %v1833_v28  ;;  %v1830_v1 = vmax.bf16 %v4706_v52, %v1814_v58  ;;  %v2892_v2 = vcombine.low %v1381_v36, %v1393_v34  ;;  %v1369_v5 = vrot.slane %v1361_v45, %v3870_v39  ;;  %v1357_v31 = vrot.slane %v1349_v25, %v3870_v39  ;;  %v1337_v28 = vpop.permute.xlu1 %1336  ;;  %v4751_v58 = vld [vmem:[#allocation12_spill] sm:$0xff]  ;;  %v3342_v36 = vld [vmem:[%s4665_s5 + $0x64] ss:$8 sps:$4 sm:$0xff]   ;;  %v3344_v47 = vld [vmem:[%s4665_s5 + $0x60] ss:$8 sps:$4 sm:$0xff]  }
 0x253   :  { %3085 = vmatpush3.bf16.msra.mxu0 %v1825_v0  ;;  %v1805_v6 = vadd.bf16 %v2893_v50, %v4740_v4  ;;  %v1822_v15 = vmax.bf16 %v4706_v52, %v1806_v51  ;;  %v2899_v38 = vcombine.low %v1549_v49, %v1561_v61  ;;  %v1537_v19 = vrot.slane %v1529_v21, %v3870_v39  ;;  %v4742_v0 = vld [vmem:[#allocation8_spill] sm:$0xff]  ;;  %v3324_v51 = vld [vmem:[%s4665_s5] ss:$8 sps:$4 sm:$0xff]   ;;  %v3336_v50 = vld [vmem:[%s4665_s5 + $0x44] ss:$8 sps:$4 sm:$0xff]  }
 0x254   :  { %3086 = vmatprep.subr.bf16.mxu0 %v1832_v29  ;;  %v1525_v60 = vrot.slane %v1517_v9, %v3870_v39  ;;  %v1325_v37 = vpop.permute.xlu0 %1324  ;;  %v4743_v13 = vpack.c.bf16 %v4741_v26, %v4742_v0  ;;  %v4744_v29 = vld [vmem:[#allocation15_spill] sm:$0xff]  ;;  %v1828_v42 = vmax.bf16 %v4706_v52, %v1812_v59  ;;  %v2891_v16 = vcombine.low %v1357_v31, %v1369_v5  ;;  %v3329_v21 = vld [vmem:[%s4665_s5 + $0x10] ss:$8 sps:$4 sm:$0xff]   ;;  %v3339_v34 = vld [vmem:[%s4665_s5 + $0x54] ss:$8 sps:$4 sm:$0xff]  }
 0x255   :  { %v1821_v40 = vmax.bf16 %v4706_v52, %v1805_v6  ;;  %v4746_v24 = vpack.c.bf16 %v4744_v29, %v4745_v22  ;;  %v1345_v43 = vrot.slane %v1337_v28, %v3870_v39  ;;  %v1333_v45 = vrot.slane %v1325_v37, %v3870_v39  ;;  %v3330_v9 = vld [vmem:[%s4665_s5 + $0x24] ss:$8 sps:$4 sm:$0xff]   ;;  %v3345_v61 = vld [vmem:[%s4665_s5 + $0x74] ss:$8 sps:$4 sm:$0xff]   ;;  %v3347_v49 = vld [vmem:[%s4665_s5 + $0x70] ss:$8 sps:$4 sm:$0xff]  }
 0x256   :  { %v1804_v18 = vadd.bf16 %v2892_v2, %v4743_v13  ;;  %v2898_v25 = vcombine.low %v1525_v60, %v1537_v19  ;;  %v4749_v27 = vpack.c.bf16 %v4747_v44, %v4748_v55  ;;  %v4755_v63 = vpack.c.bf16 %v4753_v41, %v4754_v17  ;;  %v3348_v53 = vld [vmem:[%s4665_s5 + $0x84] ss:$8 sps:$4 sm:$0xff]   ;;  %v3350_v14 = vld [vmem:[%s4665_s5 + $0x80] ss:$8 sps:$4 sm:$0xff]   ;;  %v3351_v4 = vld [vmem:[%s4665_s5 + $0x94] ss:$8 sps:$4 sm:$0xff]  }
 0x257   :  { %3087 = vmatpush3.bf16.msra.mxu0 %v1824_v20  ;;  %v1811_v3 = vadd.bf16 %v2899_v38, %v4746_v24  ;;  %v2890_v23 = vcombine.low %v1333_v45, %v1345_v43  ;;  %v3353_v6 = vld [vmem:[%s4665_s5 + $0x90] ss:$8 sps:$4 sm:$0xff]   ;;  %v3356_v59 = vld [vmem:[%s4665_s5 + $0xa0] ss:$8 sps:$4 sm:$0xff]   ;;  %v3360_v5 = vld [vmem:[%s4665_s5 + $0xc4] ss:$8 sps:$4 sm:$0xff]  }
 0x258   :  { %3088 = vmatprep.subr.bf16.mxu0 %v1831_v54  ;;  %v1803_v20 = vadd.bf16 %v2891_v16, %v4749_v27  ;;  %v1820_v56 = vmax.bf16 %v4706_v52, %v1804_v18  ;;  %v4752_v54 = vpack.c.bf16 %v4750_v57, %v4751_v58  ;;  %v3359_v2 = vld [vmem:[%s4665_s5 + $0xb0] ss:$8 sps:$4 sm:$0xff]   ;;  %v3362_v31 = vld [vmem:[%s4665_s5 + $0xc0] ss:$8 sps:$4 sm:$0xff]   ;;  %v3363_v38 = vld [vmem:[%s4665_s5 + $0xd4] ss:$8 sps:$4 sm:$0xff]  }
 0x259   :  { %v1827_v33 = vmax.bf16 %v4706_v52, %v1811_v3  ;;  %v1802_v62 = vadd.bf16 %v2890_v23, %v4755_v63  ;;  %v3365_v19 = vld [vmem:[%s4665_s5 + $0xd0] ss:$8 sps:$4 sm:$0xff]   ;;  %v3366_v60 = vld [vmem:[%s4665_s5 + $0xe4] ss:$8 sps:$4 sm:$0xff]   ;;  %v3368_v28 = vld [vmem:[%s4665_s5 + $0xe0] ss:$8 sps:$4 sm:$0xff]  }
 0x25a   :  { %v1810_v12 = vadd.bf16 %v2898_v25, %v4752_v54  ;;  %v1819_v46 = vmax.bf16 %v4706_v52, %v1803_v20  ;;  %v3369_v37 = vld [vmem:[%s4665_s5 + $0xf4] ss:$8 sps:$4 sm:$0xff]   ;;  %v3371_v26 = vld [vmem:[%s4665_s5 + $0xf0] ss:$8 sps:$4 sm:$0xff]  }
 0x25b   :  { %3089 = vmatpush3.bf16.msra.mxu0 %v1823_v11  ;;  %v1818_v30 = vmax.bf16 %v4706_v52, %v1802_v62  ;;  %v3327_v11 = vld [vmem:[%s4665_s5 + $0x14] ss:$8 sps:$4 sm:$0xff]  }
 0x25c   :  { %3090 = vmatprep.subr.bf16.mxu0 %v1830_v1  ;;  %v1826_v35 = vmax.bf16 %v4706_v52, %v1810_v12  ;;  %v3335_v1 = vld [vmem:[%s4665_s5 + $0x30] ss:$8 sps:$4 sm:$0xff]  }
 0x25f   :  { %3091 = vmatpush3.bf16.msra.mxu0 %v1822_v15  ;;  %v3354_v15 = vld [vmem:[%s4665_s5 + $0xa4] ss:$8 sps:$4 sm:$0xff]  }
 0x260   :  { %3092 = vmatprep.subr.bf16.mxu0 %v1829_v8  ;;  %v3357_v8 = vld [vmem:[%s4665_s5 + $0xb4] ss:$8 sps:$4 sm:$0xff]  }
 0x263   :  { %3093 = vmatpush3.bf16.msra.mxu0 %v1821_v40 }
 0x264   :  { %3094 = vmatprep.subr.bf16.mxu0 %v1828_v42 }
 0x267   :  { %3095 = vmatpush3.bf16.msra.mxu0 %v1820_v56 }
 0x268   :  { %3096 = vmatprep.subr.bf16.mxu0 %v1827_v33 }
 0x26b   :  { %3097 = vmatpush3.bf16.msra.mxu0 %v1819_v46 }
 0x26c   :  { %3098 = vmatprep.subr.bf16.mxu0 %v1826_v35 }
 0x26f   :  { %3099 = vmatpush3.bf16.msra.mxu0 %v1818_v30 }
 0x272   :  { %2059 = vmatmul.mubr.bf16.vlgmr.msra.gmra.mxu0 %v3324_v51  ;;  %v4436_v51 = vld.sshfl [vmem:[%s4666_s7] sm:$0x33 pattern:$0x76325410] }
 0x273   :  { %2066 = vmatprep.mubr.bf16.mxu0 %v3327_v11  ;;  %4765 = vst [vmem:[#allocation14_spill] sm:$0xff] %v4436_v51 }
 0x27a   :  { %2067 = vmatmul.mubr.bf16.gmra.mxu0 %v3329_v21  ;;  %v2762_v21 = vcombine.high %v4436_v51, %v4436_v51 }
 0x27b   :  { %2074 = vmatprep.mubr.bf16.mxu0 %v3330_v9 }
 0x27c   :  { %2797 = vmatprep.mubr.bf16.mxu1 %v2762_v21 }
 0x282   :  { %2075 = vmatmul.mubr.bf16.gmra.mxu0 %v3332_v7 }
 0x283   :  { %2082 = vmatprep.mubr.bf16.mxu0 %v3333_v32 }
 0x28a   :  { %2083 = vmatmul.mubr.bf16.gmra.mxu0 %v3335_v1 }
 0x28b   :  { %2090 = vmatprep.mubr.bf16.mxu0 %v3336_v50 }
 0x292   :  { %2091 = vmatmul.mubr.bf16.gmra.mxu0 %v3338_v48 }
 0x293   :  { %2098 = vmatprep.mubr.bf16.mxu0 %v3339_v34 }
 0x29a   :  { %2099 = vmatmul.mubr.bf16.gmra.mxu0 %v3341_v10 }
 0x29b   :  { %2106 = vmatprep.mubr.bf16.mxu0 %v3342_v36 }
 0x2a2   :  { %2107 = vmatmul.mubr.bf16.gmra.mxu0 %v3344_v47 }
 0x2a3   :  { %2114 = vmatprep.mubr.bf16.mxu0 %v3345_v61 }
 0x2aa   :  { %2115 = vmatmul.mubr.bf16.gmra.mxu0 %v3347_v49 }
 0x2ab   :  { %2122 = vmatprep.mubr.bf16.mxu0 %v3348_v53 }
 0x2b2   :  { %2123 = vmatmul.mubr.bf16.gmra.mxu0 %v3350_v14 }
 0x2b3   :  { %2130 = vmatprep.mubr.bf16.mxu0 %v3351_v4 }
 0x2ba   :  { %2131 = vmatmul.mubr.bf16.gmra.mxu0 %v3353_v6 }
 0x2bb   :  { %2138 = vmatprep.mubr.bf16.mxu0 %v3354_v15 }
 0x2c2   :  { %2139 = vmatmul.mubr.bf16.gmra.mxu0 %v3356_v59 }
 0x2c3   :  { %2146 = vmatprep.mubr.bf16.mxu0 %v3357_v8 }
 0x2ca   :  { %2147 = vmatmul.mubr.bf16.gmra.mxu0 %v3359_v2  ;;  %v4456_v2 = vpop.permute.xlu1 %2609 }
 0x2cb   :  { %2154 = vmatprep.mubr.bf16.mxu0 %v3360_v5  ;;  %v4458_v5 = vpop.permute.xlu0 %2597 }
 0x2d2   :  { %2155 = vmatmul.mubr.bf16.gmra.mxu0 %v3362_v31 }
 0x2d3   :  { %2162 = vmatprep.mubr.bf16.mxu0 %v3363_v38 }
 0x2da   :  { %2163 = vmatmul.mubr.bf16.gmra.mxu0 %v3365_v19 }
 0x2db   :  { %2170 = vmatprep.mubr.bf16.mxu0 %v3366_v60 }
 0x2e2   :  { %2171 = vmatmul.mubr.bf16.gmra.mxu0 %v3368_v28 }
 0x2e3   :  { %2178 = vmatprep.mubr.bf16.mxu0 %v3369_v37  ;;  %v4464_v37 = vpop.permute.xlu1 %2417 }
 0x2ea   :  { %2179 = vmatmul.mubr.bf16.gmra.mxu0 %v3371_v26  ;;  %v4466_v26 = vpop.permute.xlu0 %2405 }
 0x332   :  { %v3100_v0 = vpop.f32.mrf.mxu0 }
 0x334   :  { %v3101_v13 = vpop.f32.mrf.mxu0 }
 0x335   :  { %v4407_v18 = vadd.f32 %v3101_v13, %v3100_v0 }
 0x336   :  { %v3103_v40 = vpop.f32.mrf.mxu0 }
 0x337   :  { %4756 = vst [vmem:[#allocation11_spill] sm:$0xff] %v4407_v18 }
 0x338   :  { %v3104_v29 = vpop.f32.mrf.mxu0 }
 0x339   :  { %v4409_v22 = vadd.f32 %v3104_v29, %v3103_v40 }
 0x33a   :  { %v3106_v24 = vpop.f32.mrf.mxu0 }
 0x33b   :  { %4757 = vst [vmem:[#allocation10_spill] sm:$0xff] %v4409_v22  ;;  %v2426_v22 = vrot.slane %v4464_v37, %v3870_v39 }
 0x33c   :  { %v3107_v42 = vpop.f32.mrf.mxu0 }
 0x33d   :  { %v4413_v16 = vadd.f32 %v3107_v42, %v3106_v24  ;;  %v4472_v42 = vpop.permute.xlu1 %2585 }
 0x33e   :  { %v3109_v43 = vpop.f32.mrf.mxu0 }
 0x33f   :  { %4758 = vst [vmem:[#allocation16_spill] sm:$0xff] %v4413_v16 }
 0x340   :  { %v3110_v45 = vpop.f32.mrf.mxu0 }
 0x341   :  { %v4415_v25 = vadd.f32 %v3110_v45, %v3109_v43  ;;  %v4474_v43 = vpop.permute.xlu0 %2573 }
 0x342   :  { %v3112_v44 = vpop.f32.mrf.mxu0 }
 0x343   :  { %4759 = vst [vmem:[#allocation17_spill] sm:$0xff] %v4415_v25  ;;  %v2618_v25 = vrot.slane %v4456_v2, %v3870_v39 }
 0x344   :  { %v3113_v27 = vpop.f32.mrf.mxu0 }
 0x345   :  { %v4419_v20 = vadd.f32 %v3113_v27, %v3112_v44 }
 0x346   :  { %v3115_v56 = vpop.f32.mrf.mxu0 }
 0x347   :  { %4760 = vst [vmem:[#allocation9_spill] sm:$0xff] %v4419_v20  ;;  %v2594_v20 = vrot.slane %v4472_v42, %v3870_v39 }
 0x348   :  { %v3116_v57 = vpop.f32.mrf.mxu0 }
 0x349   :  { %v4421_v58 = vadd.f32 %v3116_v57, %v3115_v56 }
 0x34a   :  { %v3118_v54 = vpop.f32.mrf.mxu0 }
 0x34b   :  { %4761 = vst [vmem:[#allocation7_spill] sm:$0xff] %v4421_v58  ;;  %v2582_v58 = vrot.slane %v4474_v43, %v3870_v39 }
 0x34c   :  { %v3119_v33 = vpop.f32.mrf.mxu0 }
 0x34d   :  { %v4425_v23 = vadd.f32 %v3119_v33, %v3118_v54  ;;  %v4482_v33 = vpop.permute.xlu1 %2393 }
 0x34e   :  { %v3121_v41 = vpop.f32.mrf.mxu0 }
 0x34f   :  { %4762 = vst [vmem:[#allocation3_spill] sm:$0xff] %v4425_v23 }
 0x350   :  { %v3122_v17 = vpop.f32.mrf.mxu0 }
 0x351   :  { %v4427_v63 = vadd.f32 %v3122_v17, %v3121_v41  ;;  %v4484_v41 = vpop.permute.xlu0 %2381 }
 0x352   :  { %v3124_v62 = vpop.f32.mrf.mxu0  ;;  %v2390_v42 = vrot.slane %v4484_v41, %v3870_v39 }
 0x353   :  { %4763 = vst [vmem:[#allocation8_spill] sm:$0xff] %v4427_v63 }
 0x354   :  { %v3125_v35 = vpop.f32.mrf.mxu0 }
 0x355   :  { %v4431_v30 = vadd.f32 %v3125_v35, %v3124_v62 }
 0x356   :  { %v3127_v11 = vpop.f32.mrf.mxu0 }
 0x357   :  { %4764 = vst [vmem:[#allocation15_spill] sm:$0xff] %v4431_v30 }
 0x358   :  { %v3128_v9 = vpop.f32.mrf.mxu0 }
 0x359   :  { %v4440_v7 = vadd.f32 %v3128_v9, %v3127_v11  ;;  %v4494_v9 = vpop.permute.xlu1 %2561 }
 0x35a   :  { %v3130_v32 = vpop.f32.mrf.mxu0  ;;  %v2570_v43 = vrot.slane %v4494_v9, %v3870_v39 }
 0x35b   :  { %4766 = vst [vmem:[#allocation4_spill] sm:$0xff] %v4440_v7 }
 0x35c   :  { %v3131_v50 = vpop.f32.mrf.mxu0 }
 0x35d   :  { %v4444_v48 = vadd.f32 %v3131_v50, %v3130_v32  ;;  %v4496_v32 = vpop.permute.xlu0 %2549 }
 0x35e   :  { %v3133_v34 = vpop.f32.mrf.mxu0 }
 0x360   :  { %v3134_v10 = vpop.f32.mrf.mxu0 }
 0x361   :  { %v4446_v36 = vadd.f32 %v3134_v10, %v3133_v34 }
 0x362   :  { %v3136_v47 = vpop.f32.mrf.mxu0 }
 0x364   :  { %v3137_v49 = vpop.f32.mrf.mxu0 }
 0x365   :  { %v4450_v53 = vadd.f32 %v3137_v49, %v3136_v47  ;;  %v4504_v47 = vpop.permute.xlu1 %2369  ;;  %v4506_v49 = vpop.permute.xlu0 %2357 }
 0x366   :  { %v3139_v14 = vpop.f32.mrf.mxu0 }
 0x368   :  { %v3140_v4 = vpop.f32.mrf.mxu0 }
 0x369   :  { %v4452_v6 = vadd.f32 %v3140_v4, %v3139_v14 }
 0x36a   :  { %v3142_v15 = vpop.f32.mrf.mxu0 }
 0x36c   :  { %v3143_v8 = vpop.f32.mrf.mxu0 }
 0x36d   :  { %v4460_v31 = vadd.f32 %v3143_v8, %v3142_v15  ;;  %v4514_v8 = vpop.permute.xlu1 %2537 }
 0x36e   :  { %v3145_v38 = vpop.f32.mrf.mxu0 }
 0x370   :  { %v3146_v19 = vpop.f32.mrf.mxu0 }
 0x371   :  { %v4462_v60 = vadd.f32 %v3146_v19, %v3145_v38  ;;  %v4516_v38 = vpop.permute.xlu0 %2525 }
 0x372   :  { %v3148_v28 = vpop.f32.mrf.mxu0 }
 0x374   :  { %v3149_v13 = vpop.f32.mrf.mxu0 }
 0x375   :  { %v4470_v40 = vadd.f32 %v3149_v13, %v3148_v28 }
 0x376   :  { %v3151_v29 = vpop.f32.mrf.mxu0 }
 0x377   :  { %4767 = vst [vmem:[#allocation5_spill] sm:$0xff] %v4470_v40  ;;  %v2414_v40 = vrot.slane %v4466_v26, %v3870_v39 }
 0x378   :  { %v3152_v24 = vpop.f32.mrf.mxu0 }
 0x379   :  { %v4476_v45 = vadd.f32 %v3152_v24, %v3151_v29  ;;  %v4518_v29 = vpop.permute.xlu1 %2345  ;;  %v4520_v24 = vpop.permute.xlu0 %2333  ;;  %v2945_v63 = vcombine.low %v2414_v40, %v2426_v22 }
 0x37a   :  { %v3154_v44 = vpop.f32.mrf.mxu0 }
 0x37b   :  { %4768 = vst [vmem:[#allocation13_spill] sm:$0xff] %v4476_v45 }
 0x37c   :  { %v3155_v56 = vpop.f32.mrf.mxu0 }
 0x37d   :  { %v4480_v57 = vadd.f32 %v3155_v56, %v3154_v44  ;;  %v4524_v3 = vpop.permute.xlu0 %2501 }
 0x37e   :  { %v3157_v54 = vpop.f32.mrf.mxu0 }
 0x37f   :  { %4769 = vst [vmem:[#allocation12_spill] sm:$0xff] %v4480_v57 }
 0x380   :  { %v3158_v17 = vpop.f32.mrf.mxu0 }
 0x381   :  { %v4486_v62 = vadd.f32 %v3158_v17, %v3157_v54  ;;  %v4522_v17 = vpop.permute.xlu1 %2513  ;;  %v4528_v46 = vpop.permute.xlu0 %2309 }
 0x382   :  { %v4488_v35 = vpop.f32.mrf.mxu0 }
 0x383   :  { %4770 = vst [vmem:[#allocation2_spill] sm:$0xff] %v4486_v62  ;;  %v2606_v62 = vrot.slane %v4458_v5, %v3870_v39  ;;  %v2402_v5 = vrot.slane %v4482_v33, %v3870_v39 }
 0x384   :  { %v4492_v21 = vpop.f32.mrf.mxu0 }
 0x385   :  { %v4526_v12 = vpop.permute.xlu1 %2321  ;;  %v4532_v51 = vpop.permute.xlu0 %2477 }
 0x386   :  { %v4498_v50 = vpop.f32.mrf.mxu0 }
 0x388   :  { %v4500_v34 = vpop.f32.mrf.mxu0 }
 0x389   :  { %v4530_v0 = vpop.permute.xlu1 %2489  ;;  %v4548_v37 = vpop.permute.xlu0 %2285 }
 0x38a   :  { %v4502_v10 = vpop.f32.mrf.mxu0  ;;  %4772 = vst [vmem:[#allocation18_spill] sm:$0xff] %v4548_v37  ;;  %v2953_v37 = vcombine.low %v2606_v62, %v2618_v25  ;;  %v2378_v25 = vrot.slane %v4504_v47, %v3870_v39 }
 0x38c   :  { %v4508_v14 = vpop.f32.mrf.mxu0 }
 0x38d   :  { %v4546_v23 = vpop.permute.xlu1 %2297 }
 0x38e   :  { %v4510_v4 = vpop.f32.mrf.mxu0  ;;  %4771 = vst [vmem:[#allocation6_spill] sm:$0xff] %v4546_v23  ;;  %v2558_v23 = vrot.slane %v4496_v32, %v3870_v39 }
 0x390   :  { %v4512_v15 = vpop.f32.mrf.mxu0  ;;  %v2951_v9 = vcombine.low %v2558_v23, %v2570_v43 }
 0x391   :  { %v3171_v62 = vadd.f32 %v4512_v15, %v4510_v4  ;;  %v2510_v4 = vrot.slane %v4524_v3, %v3870_v39 }
 0x392   :  { %v3172_v19 = vpop.f32.mrf.mxu0 }
 0x394   :  { %v3173_v28 = vpop.f32.mrf.mxu0 }
 0x396   :  { %v3175_v13 = vpop.f32.mrf.mxu0 }
 0x398   :  { %v3176_v44 = vpop.f32.mrf.mxu0 }
 0x39a   :  { %v3178_v56 = vpop.f32.mrf.mxu0 }
 0x39c   :  { %v3179_v54 = vpop.f32.mrf.mxu0 }
 0x39d   :  { %v3180_v22 = vadd.f32 %v3179_v54, %v3178_v56  ;;  %v3165_v56 = vadd.f32 %v4500_v34, %v4498_v50  ;;  %v3162_v50 = vadd.f32 %v4492_v21, %v4488_v35  ;;  %v4776_v34 = vld [vmem:[#allocation4_spill] sm:$0xff] }
 0x39e   :  { %v3181_v27 = vpop.f32.mrf.mxu0 }
 0x3a0   :  { %v3182_v55 = vpop.f32.mrf.mxu0 }
 0x3a2   :  { %v3184_v11 = vpop.f32.mrf.mxu0 }
 0x3a4   :  { %v3185_v1 = vpop.f32.mrf.mxu0 }
 0x3a5   :  { %v3186_v26 = vadd.f32 %v3185_v1, %v3184_v11  ;;  %v2952_v1 = vcombine.low %v2582_v58, %v2594_v20  ;;  %v2944_v11 = vcombine.low %v2390_v42, %v2402_v5  ;;  %v2366_v20 = vrot.slane %v4506_v49, %v3870_v39 }
 0x3a6   :  { %v3187_v61 = vpop.f32.mrf.mxu0  ;;  %v2546_v58 = vrot.slane %v4514_v8, %v3870_v39  ;;  %v2197_v42 = vpack.c.bf16 %v3165_v56, %v3162_v50 }
 0x3a7   :  { %v2943_v8 = vcombine.low %v2366_v20, %v2378_v25 }
 0x3a8   :  { %v3188_v59 = vpop.f32.mrf.mxu0 }
 0x3a9   :  { %v3189_v16 = vadd.f32 %v3188_v59, %v3187_v61  ;;  %v3183_v59 = vadd.f32 %v3182_v55, %v3181_v27  ;;  %v4561_v55 = vpop.permute.xlu1 %2465  ;;  %v3177_v27 = vadd.f32 %v3176_v44, %v3175_v13  ;;  %v3168_v13 = vadd.f32 %v4508_v14, %v4502_v10 }
 0x3aa   :  { %v3190_v18 = vpop.f32.mrf.mxu0  ;;  %v2318_v10 = vrot.slane %v4528_v46, %v3870_v39 }
 0x3ab   :  { %v2201_v30 = vpack.c.bf16 %v3189_v16, %v3186_v26  ;;  %v2198_v54 = vpack.c.bf16 %v3171_v62, %v3168_v13  ;;  %v2330_v26 = vrot.slane %v4526_v12, %v3870_v39  ;;  %v4790_v13 = vld [vmem:[#allocation17_spill] sm:$0xff] }
 0x3ac   :  { %v3191_v45 = vpop.f32.mrf.mxu0 }
 0x3ad   :  { %v3192_v2 = vadd.f32 %v3191_v45, %v3190_v18  ;;  %v4773_v18 = vpack.c.bf16 %v4462_v60, %v4460_v31  ;;  %v4563_v45 = vpop.permute.xlu0 %2453  ;;  %v2729_v33 = vadd.bf16 %v2952_v1, %v2201_v30  ;;  %v4774_v30 = vpack.c.bf16 %v4452_v6, %v4450_v53  ;;  %v2274_v15 = vpop.permute.xlu1 %2273 }
 0x3ae   :  { %v3193_v57 = vpop.f32.mrf.mxu0  ;;  %v2522_v6 = vrot.slane %v4522_v17, %v3870_v39 }
 0x3af   :  { %v2722_v16 = vadd.bf16 %v2945_v63, %v4773_v18  ;;  %v2534_v63 = vrot.slane %v4516_v38, %v3870_v39  ;;  %v2721_v60 = vadd.bf16 %v2944_v11, %v4774_v30  ;;  %v2745_v49 = vmax.bf16 %v4706_v52, %v2729_v33 }
 0x3b0   :  { %v3194_v61 = vpop.f32.mrf.mxu0  ;;  %v2354_v38 = vrot.slane %v4518_v29, %v3870_v39  ;;  %v4775_v29 = vpack.c.bf16 %v4446_v36, %v4444_v48  ;;  %v2949_v14 = vcombine.low %v2510_v4, %v2522_v6  ;;  %v2498_v48 = vrot.slane %v4530_v0, %v3870_v39 }
 0x3b1   :  { %v3195_v7 = vadd.f32 %v3194_v61, %v3193_v57  ;;  %v2200_v57 = vpack.c.bf16 %v3183_v59, %v3180_v22  ;;  %v2738_v23 = vmax.bf16 %v4706_v52, %v2722_v16  ;;  %v2950_v53 = vcombine.low %v2534_v63, %v2546_v58  ;;  %v4777_v61 = vld [vmem:[#allocation15_spill] sm:$0xff]  ;;  %v2442_v5 = vpop.permute.xlu1 %2441  ;;  %v4779_v22 = vld [vmem:[#allocation6_spill] sm:$0xff] }
 0x3b2   :  { %v2720_v44 = vadd.bf16 %v2943_v8, %v4775_v29  ;;  %v2486_v36 = vrot.slane %v4532_v51, %v3870_v39  ;;  %v4778_v59 = vpack.c.bf16 %v4776_v34, %v4777_v61  ;;  %v2726_v43 = vadd.bf16 %v2949_v14, %v2198_v54  ;;  %v4788_v8 = vld [vmem:[#allocation12_spill] sm:$0xff]  ;;  %v4793_v54 = vld [vmem:[#allocation13_spill] sm:$0xff]  ;;  %v4796_v14 = vld [vmem:[#allocation10_spill] sm:$0xff] }
 0x3b3   :  { %v2202_v40 = vpack.c.bf16 %v3195_v7, %v3192_v2  ;;  %v3174_v7 = vadd.f32 %v3173_v28, %v3172_v19  ;;  %v2728_v47 = vadd.bf16 %v2951_v9, %v2200_v57  ;;  %v2342_v19 = vrot.slane %v4520_v24, %v3870_v39  ;;  %v2262_v28 = vpop.permute.xlu0 %2261  ;;  %v4782_v57 = vld [vmem:[#allocation3_spill] sm:$0xff]  ;;  %v4791_v29 = vld [vmem:[#allocation16_spill] sm:$0xff] }
 0x3b4   :  { %v2737_v24 = vmax.bf16 %v4706_v52, %v2721_v60  ;;  %v2736_v12 = vmax.bf16 %v4706_v52, %v2720_v44  ;;  %v2941_v0 = vcombine.low %v2318_v10, %v2330_v26  ;;  %v2306_v51 = vrot.slane %v4779_v22, %v3870_v39  ;;  %v4784_v60 = vld [vmem:[#allocation7_spill] sm:$0xff] }
 0x3b5   :  { %v2730_v41 = vadd.bf16 %v2953_v37, %v2202_v40  ;;  %v2199_v32 = vpack.c.bf16 %v3177_v27, %v3174_v7  ;;  %v2744_v37 = vmax.bf16 %v4706_v52, %v2728_v47  ;;  %v2942_v3 = vcombine.low %v2342_v19, %v2354_v38  ;;  %v4780_v40 = vld [vmem:[#allocation18_spill] sm:$0xff]  ;;  %v4781_v27 = vld [vmem:[#allocation8_spill] sm:$0xff] }
 0x3b6   :  { %v2294_v35 = vrot.slane %v4780_v40, %v3870_v39  ;;  %v2948_v21 = vcombine.low %v2486_v36, %v2498_v48  ;;  %v2474_v18 = vrot.slane %v4561_v55, %v3870_v39  ;;  %v2462_v16 = vrot.slane %v4563_v45, %v3870_v39 }
 0x3b7   :  { %v2746_v31 = vmax.bf16 %v4706_v52, %v2730_v41  ;;  %v2727_v17 = vadd.bf16 %v2950_v53, %v2199_v32  ;;  %v2719_v2 = vadd.bf16 %v2942_v3, %v4778_v59  ;;  %v2430_v46 = vpop.permute.xlu0 %2429  ;;  %v4783_v33 = vpack.c.bf16 %v4781_v27, %v4782_v57  ;;  %v4799_v59 = vld [vmem:[#allocation14_spill] sm:$0xff] }
 0x3b8   :  { %v2725_v9 = vadd.bf16 %v2948_v21, %v2197_v42  ;;  %v2742_v25 = vmax.bf16 %v4706_v52, %v2726_v43  ;;  %v2940_v20 = vcombine.low %v2294_v35, %v2306_v51  ;;  %v2282_v58 = vrot.slane %v2274_v15, %v3870_v39 }
 0x3b9   :  { %3196 = vmatprep.subr.bf16.mxu1 %v2746_v31  ;;  %v2743_v1 = vmax.bf16 %v4706_v52, %v2727_v17  ;;  %v2718_v41 = vadd.bf16 %v2941_v0, %v4783_v33  ;;  %v2735_v11 = vmax.bf16 %v4706_v52, %v2719_v2  ;;  %v2270_v63 = vrot.slane %v2262_v28, %v3870_v39  ;;  %v2250_v31 = vpop.permute.xlu1 %2249  ;;  %v4794_v17 = vld [vmem:[#allocation5_spill] sm:$0xff] }
 0x3ba   :  { %3197 = vmatpush3.bf16.msra.mxu1 %v2738_v23  ;;  %v2947_v55 = vcombine.low %v2462_v16, %v2474_v18  ;;  %v2450_v7 = vrot.slane %v2442_v5, %v3870_v39  ;;  %v2438_v45 = vrot.slane %v2430_v46, %v3870_v39  ;;  %v4785_v23 = vld [vmem:[#allocation9_spill] sm:$0xff]  ;;  %v2741_v53 = vmax.bf16 %v4706_v52, %v2725_v9 }
 0x3bb   :  { %3198 = vmatprep.subr.bf16.mxu1 %v2745_v49  ;;  %v2238_v30 = vpop.permute.xlu0 %2237  ;;  %v4786_v62 = vpack.c.bf16 %v4784_v60, %v4785_v23  ;;  %v2734_v47 = vmax.bf16 %v4706_v52, %v2718_v41  ;;  %v4787_v49 = vld [vmem:[#allocation2_spill] sm:$0xff]  ;;  %v2939_v6 = vcombine.low %v2270_v63, %v2282_v58  ;;  %v2258_v4 = vrot.slane %v2250_v31, %v3870_v39 }
 0x3bc   :  { %v4789_v38 = vpack.c.bf16 %v4787_v49, %v4788_v8  ;;  %v2246_v15 = vrot.slane %v2238_v30, %v3870_v39  ;;  %v2946_v28 = vcombine.low %v2438_v45, %v2450_v7  ;;  %v4792_v44 = vpack.c.bf16 %v4790_v13, %v4791_v29  ;;  %v4797_v39 = vld [vmem:[#allocation11_spill] sm:$0xff] }
 0x3bd   :  { %v2717_v32 = vadd.bf16 %v2940_v20, %v4786_v62  ;;  %v4798_v48 = vpack.c.bf16 %v4796_v14, %v4797_v39 }
 0x3be   :  { %3199 = vmatpush3.bf16.msra.mxu1 %v2737_v24  ;;  %v2724_v19 = vadd.bf16 %v2947_v55, %v4789_v38  ;;  %v2716_v24 = vadd.bf16 %v2939_v6, %v4792_v44  ;;  %v2938_v10 = vcombine.low %v2246_v15, %v2258_v4 }
 0x3bf   :  { %3200 = vmatprep.subr.bf16.mxu1 %v2744_v37  ;;  %v2733_v56 = vmax.bf16 %v4706_v52, %v2717_v32  ;;  %v4795_v37 = vpack.c.bf16 %v4793_v54, %v4794_v17  ;;  %v2752_v46 = vpop.permute.xlu0 %2751 }
 0x3c0   :  { %v2740_v26 = vmax.bf16 %v4706_v52, %v2724_v19  ;;  %v2715_v36 = vadd.bf16 %v2938_v10, %v4798_v48  ;;  %v2732_v50 = vmax.bf16 %v4706_v52, %v2716_v24 }
 0x3c1   :  { %v2723_v3 = vadd.bf16 %v2946_v28, %v4795_v37 }
 0x3c2   :  { %3201 = vmatpush3.bf16.msra.mxu1 %v2736_v12  ;;  %v2731_v61 = vmax.bf16 %v4706_v52, %v2715_v36 }
 0x3c3   :  { %3202 = vmatprep.subr.bf16.mxu1 %v2743_v1  ;;  %v2739_v34 = vmax.bf16 %v4706_v52, %v2723_v3 }
 0x3c6   :  { %3203 = vmatpush3.bf16.msra.mxu1 %v2735_v11 }
 0x3c7   :  { %3204 = vmatprep.subr.bf16.mxu1 %v2742_v25 }
 0x3ca   :  { %3205 = vmatpush3.bf16.msra.mxu1 %v2734_v47 }
 0x3cb   :  { %3206 = vmatprep.subr.bf16.mxu1 %v2741_v53 }
 0x3ce   :  { %3207 = vmatpush3.bf16.msra.mxu1 %v2733_v56 }
 0x3cf   :  { %3208 = vmatprep.subr.bf16.mxu1 %v2740_v26 }
 0x3d2   :  { %3209 = vmatpush3.bf16.msra.mxu1 %v2732_v50 }
 0x3d3   :  { %3210 = vmatprep.subr.bf16.mxu1 %v2739_v34 }
 0x3d6   :  { %3211 = vmatpush3.bf16.msra.mxu1 %v2731_v61 }
 0x3d9   :  { %2798 = vmatmul.mubr.bf16.vlgmr.msra.gmra.mxu1 %v4799_v59 }
 0x499   :  { %v3212_v2 = vpop.f32.mrf.mxu1 }
 0x49b   :  { %v3213_v12 = vpop.f32.mrf.mxu1 }
 0x49c   :  { %v3214_v5 = vadd.f32 %v3213_v12, %v3212_v2 }
 0x49d   :  { %v3215_v42 = vpop.f32.mrf.mxu1 }
 0x49e   :  { %v2800_v43 = vadd.f32 %v3214_v5, %v2752_v46 }
 0x49f   :  { %v3216_v1 = vpop.f32.mrf.mxu1 }
 0x4a0   :  { %2805 = vst [vmem:[%s4667_s9] sm:$0x7] %v2800_v43 }

</bundles_post_ra>
